<compile_context>
chip_gen: v7x
topology: tpu7x:2x2x1
jax: 0.10.0
libtpu: 0.0.40
codegen_flags: <defaults>
</compile_context>

<pallas_src>
import functools

import jax
import jax.numpy as jnp
from jax import lax
from jax.experimental import pallas as pl
from jax.experimental.pallas import tpu as pltpu


_VMEM = pl.BlockSpec(memory_space=pltpu.MemorySpace.VMEM)


# ----------------------------------------------------------------------------
# Shared in-kernel encoder math (pure jnp on loaded VMEM tiles)
# ----------------------------------------------------------------------------
def _encode(x, w1, b1, w2, b2):
    """Synthetic Time encoder.

    x : (n, C, T) float32   (original NCT layout, T on the lane axis)
    w1: (H, C)  b1: (H, 1)  w2: (H, D)  b2: (1, D)
    returns (n, D) float32 embeddings.
    """
    n, C, T = x.shape
    H = w1.shape[0]
    # First linear: K=C=4 contraction unrolled on the VPU (broadcast-MACs)
    # instead of pushing a nearly-empty tile through the MXU.
    acc = jnp.zeros((n, H, T), jnp.float32)
    for c in range(C):  # static unroll
        acc = acc + x[:, c:c + 1, :] * w1[:, c:c + 1][None, :, :]
    h = jnp.maximum(acc + b1[None, :, :], 0.0)          # ReLU, (n, H, T)
    hmean = jnp.mean(h, axis=2)                          # temporal average -> (n, H)
    # Second linear on the MXU (single small dot).
    return jnp.dot(hmean, w2, preferred_element_type=jnp.float32) + b2  # (n, D)


# ----------------------------------------------------------------------------
# Pallas kernels
# ----------------------------------------------------------------------------
def _encode_kernel(x_ref, w1_ref, b1_ref, w2_ref, b2_ref, out_ref):
    out_ref[...] = _encode(x_ref[...], w1_ref[...], b1_ref[...],
                           w2_ref[...], b2_ref[...])


def _forward_kernel(x_ref, w1_ref, b1_ref, w2_ref, b2_ref, bank_ref,
                    idx_ref, stats_ref, *, topk):
    """Fused forward: encode query, compare to bank, pick labels.

    x_ref   : (n, C, T)        query samples
    bank_ref: (per, S, D)      enrolled embeddings (per-speaker rows in sublanes)
    idx_ref : (3, 1) int32     argmin speaker index for (mean, topk, min)
    stats_ref: (3, S) float32  per-speaker (mean, topk, min) distances
    """
    v = _encode(x_ref[...], w1_ref[...], b1_ref[...], w2_ref[...], b2_ref[...])
    q = jnp.mean(v, axis=0, keepdims=True)               # (1, D) query embedding

    bank = bank_ref[...]                                  # (per, S, D)
    per, S, _ = bank.shape
    diff = bank - q[None, :, :]                           # broadcast over (per, S)
    dists = jnp.sum(diff * diff, axis=2)                  # (per, S) squared L2

    mean_d = jnp.mean(dists, axis=0, keepdims=True)       # (1, S)
    min_d = jnp.min(dists, axis=0, keepdims=True)         # (1, S)

    # top-k smallest per speaker via k iterations of (min, mask-first-argmin).
    k = min(topk, per)
    iota_p = lax.broadcasted_iota(jnp.int32, (per, S), 0)
    d = dists
    tsum = jnp.zeros((1, S), jnp.float32)
    for _ in range(k):  # static unroll, k small
        m = jnp.min(d, axis=0, keepdims=True)
        tsum = tsum + m
        first = jnp.min(jnp.where(d == m, iota_p, per), axis=0, keepdims=True)
        d = jnp.where(iota_p == first, jnp.float32(jnp.inf), d)
    topk_d = tsum / jnp.float32(k)

    # argmin over speakers (first occurrence on ties, like PyTorch strict `<`).
    iota_s = lax.broadcasted_iota(jnp.int32, (1, S), 1)

    def _argmin_row(row):  # (1, S) -> (1, 1) int32
        m = jnp.min(row, axis=1, keepdims=True)
        return jnp.min(jnp.where(row == m, iota_s, S), axis=1, keepdims=True)

    stats_ref[0:1, :] = mean_d
    stats_ref[1:2, :] = topk_d
    stats_ref[2:3, :] = min_d
    idx_ref[0:1, :] = _argmin_row(mean_d)
    idx_ref[1:2, :] = _argmin_row(topk_d)
    idx_ref[2:3, :] = _argmin_row(min_d)


# ----------------------------------------------------------------------------
# JIT wrappers
# ----------------------------------------------------------------------------
@jax.jit
def encode(x_nct, w1, b1, w2, b2):
    """x_nct: (n, C, T) -> (n, D) embeddings (used once, batched, at enrollment)."""
    n = x_nct.shape[0]
    D = w2.shape[1]
    return pl.pallas_call(
        _encode_kernel,
        out_shape=jax.ShapeDtypeStruct((n, D), jnp.float32),
        in_specs=[_VMEM] * 5,
        out_specs=_VMEM,
    )(x_nct.astype(jnp.float32), w1, b1, w2, b2)


@functools.partial(jax.jit, static_argnames=("topk",))
def fused_forward(x_nct, w1, b1, w2, b2, bank_psd, *, topk):
    """One pallas_call for the whole forward pass."""
    S = bank_psd.shape[1]
    kernel = functools.partial(_forward_kernel, topk=topk)
    idx, stats = pl.pallas_call(
        kernel,
        out_shape=(jax.ShapeDtypeStruct((3, 1), jnp.int32),
                   jax.ShapeDtypeStruct((3, S), jnp.float32)),
        in_specs=[_VMEM] * 6,
        out_specs=(_VMEM, _VMEM),
    )(x_nct.astype(jnp.float32), w1, b1, w2, b2, bank_psd)
    return idx, stats


# ----------------------------------------------------------------------------
# Conference (thin Python glue around the fused Pallas hot path)
# ----------------------------------------------------------------------------
class Conference:
    def __init__(self, params, topk=4):
        self.params = params          # (w1 (H,C), b1 (H,1), w2 (H,D), b2 (1,D))
        self.topk = topk
        self.labels = []
        self.bank = None              # (per, S, D) enrolled embeddings
        self.per_speaker = None

    def getvector(self, sample_nct):
        return encode(sample_nct, *self.params)

    def initspeakers(self, speakers, topk=4):
        self.topk = topk
        self.labels = [label for label, _ in speakers]
        counts = {samples.shape[0] for _, samples in speakers}
        if len(counts) != 1:
            raise ValueError("all speakers must enroll the same number of samples")
        per = counts.pop()
        S = len(speakers)
        # Batched enrollment: ONE encoder pallas_call for all speakers.
        all_samples = jnp.concatenate([samples for _, samples in speakers], axis=0)
        vecs = self.getvector(all_samples)                     # (S*per, D)
        D = vecs.shape[1]
        # Store bank as (per, S, D): per-speaker rows map to sublanes so the
        # fused kernel reduces to lane-layout (1, S) statistics directly.
        self.bank = jnp.transpose(vecs.reshape(S, per, D), (1, 0, 2))
        self.per_speaker = per

    def forward(self, sample_nct, gold_label=None):
        k = min(self.topk, self.per_speaker)
        idx, stats = fused_forward(sample_nct, *self.params, self.bank, topk=k)
        idx_host = jax.device_get(idx)        # single host sync for all 3 argmins
        mean_label = self.labels[int(idx_host[0, 0])]
        topk_label = self.labels[int(idx_host[1, 0])]
        min_label = self.labels[int(idx_host[2, 0])]
        # TODO(synk): Speaker.explore()/stabilize() state updates skipped.
        return (mean_label, topk_label, min_label), stats

    __call__ = forward


# ----------------------------------------------------------------------------
# Main
# ----------------------------------------------------------------------------
if __name__ == "__main__":
    key = jax.random.PRNGKey(0)

    # Small, TPU-friendly sizes consistent with the forward pass.
    C, T = 4, 16         # channels, time frames (sample layout: (N, C, T))
    H, D = 32, 32        # hidden width, embedding dim
    S, N = 3, 5          # speakers, enrollment samples per speaker
    TOPK = 4

    k_w1, k_b1, k_w2, k_b2, k_spk, k_query = jax.random.split(key, 6)
    w1 = jax.random.normal(k_w1, (H, C), jnp.float32) * 0.1   # (out, in) like nn.Linear
    b1 = jax.random.normal(k_b1, (H, 1), jnp.float32) * 0.01
    w2 = jax.random.normal(k_w2, (H, D), jnp.float32) * 0.1
    b2 = jax.random.normal(k_b2, (1, D), jnp.float32) * 0.01

    conf = Conference((w1, b1, w2, b2), topk=TOPK)

    # Enrollment: S speakers, N samples each, shape (N, C, T).
    spk_keys = jax.random.split(k_spk, S)
    speakers = []
    for s in range(S):
        base = jax.random.normal(spk_keys[s], (1, C, T), jnp.float32)
        noise = jax.random.normal(jax.random.fold_in(spk_keys[s], 7),
                                  (N, C, T), jnp.float32) * 0.1
        speakers.append((s, base + noise))
    conf.initspeakers(speakers, topk=TOPK)

    # Query sample: a noisy version of speaker 1.
    query_sample = speakers[1][1][:1] + \
        jax.random.normal(k_query, (1, C, T), jnp.float32) * 0.05

    (mean_label, topk_label, min_label), stats = conf(query_sample, gold_label=1)
    jax.block_until_ready(stats)
    print("KERNEL_OK")
</pallas_src>

<mosaic_0001>
module attributes {stable_mosaic.version = 11 : i64} {
  func.func @_encode_kernel(%arg0: memref<15x4x16xf32, #tpu.memory_space<vmem>>, %arg1: memref<32x4xf32, #tpu.memory_space<vmem>>, %arg2: memref<32x1xf32, #tpu.memory_space<vmem>>, %arg3: memref<32x32xf32, #tpu.memory_space<vmem>>, %arg4: memref<1x32xf32, #tpu.memory_space<vmem>>, %arg5: memref<15x32xf32, #tpu.memory_space<vmem>>) attributes {dimension_semantics = [], scalar_prefetch = 0 : i64, scratch_operands = 0 : i64, tpu.core_type = #tpu.core_type<tc>} {
    %c0 = arith.constant 0 : index
    %c0_0 = arith.constant 0 : index
    %c0_1 = arith.constant 0 : index
    %0 = vector.load %arg0[%c0, %c0_0, %c0_1] : memref<15x4x16xf32, #tpu.memory_space<vmem>>, vector<15x4x16xf32>
    %c0_2 = arith.constant 0 : index
    %c0_3 = arith.constant 0 : index
    %1 = vector.load %arg1[%c0_2, %c0_3] : memref<32x4xf32, #tpu.memory_space<vmem>>, vector<32x4xf32>
    %c0_4 = arith.constant 0 : index
    %c0_5 = arith.constant 0 : index
    %2 = vector.load %arg2[%c0_4, %c0_5] : memref<32x1xf32, #tpu.memory_space<vmem>>, vector<32x1xf32>
    %c0_6 = arith.constant 0 : index
    %c0_7 = arith.constant 0 : index
    %3 = vector.load %arg3[%c0_6, %c0_7] : memref<32x32xf32, #tpu.memory_space<vmem>>, vector<32x32xf32>
    %c0_8 = arith.constant 0 : index
    %c0_9 = arith.constant 0 : index
    %4 = vector.load %arg4[%c0_8, %c0_9] : memref<1x32xf32, #tpu.memory_space<vmem>>, vector<1x32xf32>
    %cst = arith.constant 0.000000e+00 : f32
    %5 = vector.broadcast %cst : f32 to vector<15x32x16xf32>
    %6 = vector.extract_strided_slice %0 {offsets = [0, 0, 0], sizes = [15, 1, 16], strides = [1, 1, 1]} : vector<15x4x16xf32> to vector<15x1x16xf32>
    %7 = vector.extract_strided_slice %1 {offsets = [0, 0], sizes = [32, 1], strides = [1, 1]} : vector<32x4xf32> to vector<32x1xf32>
    %8 = vector.shape_cast %7 : vector<32x1xf32> to vector<1x32x1xf32>
    %9 = vector.broadcast %6 : vector<15x1x16xf32> to vector<15x32x16xf32>
    %10 = vector.broadcast %8 : vector<1x32x1xf32> to vector<15x32x16xf32>
    %11 = arith.mulf %9, %10 : vector<15x32x16xf32>
    %12 = arith.addf %5, %11 : vector<15x32x16xf32>
    %13 = vector.extract_strided_slice %0 {offsets = [0, 1, 0], sizes = [15, 1, 16], strides = [1, 1, 1]} : vector<15x4x16xf32> to vector<15x1x16xf32>
    %14 = vector.extract_strided_slice %1 {offsets = [0, 1], sizes = [32, 1], strides = [1, 1]} : vector<32x4xf32> to vector<32x1xf32>
    %15 = vector.shape_cast %14 : vector<32x1xf32> to vector<1x32x1xf32>
    %16 = vector.broadcast %13 : vector<15x1x16xf32> to vector<15x32x16xf32>
    %17 = vector.broadcast %15 : vector<1x32x1xf32> to vector<15x32x16xf32>
    %18 = arith.mulf %16, %17 : vector<15x32x16xf32>
    %19 = arith.addf %12, %18 : vector<15x32x16xf32>
    %20 = vector.extract_strided_slice %0 {offsets = [0, 2, 0], sizes = [15, 1, 16], strides = [1, 1, 1]} : vector<15x4x16xf32> to vector<15x1x16xf32>
    %21 = vector.extract_strided_slice %1 {offsets = [0, 2], sizes = [32, 1], strides = [1, 1]} : vector<32x4xf32> to vector<32x1xf32>
    %22 = vector.shape_cast %21 : vector<32x1xf32> to vector<1x32x1xf32>
    %23 = vector.broadcast %20 : vector<15x1x16xf32> to vector<15x32x16xf32>
    %24 = vector.broadcast %22 : vector<1x32x1xf32> to vector<15x32x16xf32>
    %25 = arith.mulf %23, %24 : vector<15x32x16xf32>
    %26 = arith.addf %19, %25 : vector<15x32x16xf32>
    %27 = vector.extract_strided_slice %0 {offsets = [0, 3, 0], sizes = [15, 1, 16], strides = [1, 1, 1]} : vector<15x4x16xf32> to vector<15x1x16xf32>
    %28 = vector.extract_strided_slice %1 {offsets = [0, 3], sizes = [32, 1], strides = [1, 1]} : vector<32x4xf32> to vector<32x1xf32>
    %29 = vector.shape_cast %28 : vector<32x1xf32> to vector<1x32x1xf32>
    %30 = vector.broadcast %27 : vector<15x1x16xf32> to vector<15x32x16xf32>
    %31 = vector.broadcast %29 : vector<1x32x1xf32> to vector<15x32x16xf32>
    %32 = arith.mulf %30, %31 : vector<15x32x16xf32>
    %33 = arith.addf %26, %32 : vector<15x32x16xf32>
    %34 = vector.shape_cast %2 : vector<32x1xf32> to vector<1x32x1xf32>
    %35 = vector.broadcast %34 : vector<1x32x1xf32> to vector<15x32x16xf32>
    %36 = arith.addf %33, %35 : vector<15x32x16xf32>
    %cst_10 = arith.constant 0.000000e+00 : f32
    %37 = vector.broadcast %cst_10 : f32 to vector<15x32x16xf32>
    %38 = arith.maximumf %36, %37 : vector<15x32x16xf32>
    %cst_11 = arith.constant dense<0.000000e+00> : vector<15x32xf32>
    %39 = vector.multi_reduction <add>, %38, %cst_11 [2] : vector<15x32x16xf32> to vector<15x32xf32>
    %cst_12 = arith.constant 1.600000e+01 : f32
    %40 = vector.broadcast %cst_12 : f32 to vector<15x32xf32>
    %41 = arith.divf %39, %40 : vector<15x32xf32>
    %cst_13 = arith.constant dense<0.000000e+00> : vector<15x32xf32>
    %42 = tpu.matmul %41, %3, %cst_13 {dimension_numbers = #tpu.dot_dimension_numbers<[1], [0], [0], [1], [0, 0, 1, 1], [], []>} : vector<15x32xf32>, vector<32x32xf32>, vector<15x32xf32> -> vector<15x32xf32>
    %43 = vector.broadcast %4 : vector<1x32xf32> to vector<15x32xf32>
    %44 = arith.addf %42, %43 : vector<15x32xf32>
    %c0_14 = arith.constant 0 : index
    %c0_15 = arith.constant 0 : index
    %45 = vector.load %arg5[%c0_14, %c0_15] : memref<15x32xf32, #tpu.memory_space<vmem>>, vector<15x32xf32>
    tpu.vector_store %arg5[%c0_14, %c0_15], %44 {strides = array<i32>} : memref<15x32xf32, #tpu.memory_space<vmem>>, vector<15x32xf32>,
    return
  }
}

</mosaic_0001>

<bundles_post_ra>
// kernel: encode.1
= control target key start
LH: loop header
LB: loop body
LE: loop exit
PB: predicated region body
PF: predicated region fallthrough
CT: control target
= control target key end

     0   :  { %10 = vsyncpa [#allocation3], 0  ;;  %s3118_s0 = inlined_call_operand.vmem [shape: f32[15,4,16], index: 0, kind: input, shape index: {}]   ;;  %s3119_s1 = inlined_call_operand.vmem [shape: f32[32,4], index: 1, kind: input, shape index: {}]   ;;  %s3120_s2 = inlined_call_operand.vmem [shape: f32[32,1], index: 2, kind: input, shape index: {}]   ;;  %s3121_s3 = inlined_call_operand.hbm [shape: f32[32,32], index: 3, kind: input, shape index: {}]   ;;  %s3122_s4 = inlined_call_operand.vmem [shape: f32[1,32], index: 4, kind: input, shape index: {}]   ;;  %s3123_s5 = inlined_call_operand.hbm [shape: f32[15,32], index: 5, kind: output, shape index: {}]  }
   0x1   :  { %11 = vsyncpa [#allocation4], 0  ;;  %s1805_s18 = smov [#allocation2]   ;;  %s1757_s22 = scalar_lea.hbm %s3121_s3, 512 }
   0x2   :  { %s23_s19 = sshll.u32 %s1805_s18, 4  ;;  %p1758_p0 = scmp.ne.s32.totalorder %s3121_s3, %s1757_s22  ;;  %s24_s19 = int_to_ptr.vmem [resolvable:$true] %s23_s19 }
   0x3   :  { %p1761_p1 = scmp.lt.u32.totalorder %s1757_s22, %s3121_s3 }
   0x5   :  { %p1763_p2 = pnand %p1761_p1, %p1758_p0 }
   0x7   :  { %1766 = shalt.err (!%p1763_p2)
}
   0x8   :  { %s1767_s27 = scalar_lea.vmem %s24_s19, 512  ;;  %p1772_p4 = scmp.lt.s32.totalorder %s24_s19, %s24_s19 }
   0x9   :  { %p1768_p3 = scmp.ne.s32.totalorder %s24_s19, %s1767_s27  ;;  %p1773_p5 = scmp.lt.s32.totalorder %s1767_s27, %s1767_s27 }
   0xb   :  { %p1774_p6 = por %p1773_p5, %p1772_p4 }
   0xd   :  { %p1775_p7 = pnand %p1774_p6, %p1768_p3 }
   0xf   :  { %1778 = shalt.err (!%p1775_p7)
}
  0x10   :  { %s1806_s28 = smov 128   ;;  %s1807_s29 = smov 8  }
  0x11   :  { %29 = dma.hbm_to_vmem [thread:$0]  %s3121_s3, 512, %s24_s19, [#allocation3], %s1806_s28, %s1806_s28, %s1807_s29  }
  0x12   :  { %1801 = dma.done.wait [#allocation3], 512  }
  0x13   :  { %1802 = vsyncadd [#allocation3], 4294966784  ;;  %v1808_v0 = vmov 2   ;;  %v1809_v1 = vmov 1   ;;  %v50_v2 = vld [vmem:[%s3119_s1] sm:$0xff]  ;;  %v53_v3 = vld [vmem:[%s3119_s1 + $0x18] sm:$0xff]  ;;  %v3124_v12 = vlaneseq }
  0x14   :  { %1749 = vset.pattern.permute.xlu0 %v1808_v0  ;;  %1748 = vset.pattern.permute.xlu1 %v1809_v1  ;;  %v51_v4 = vld [vmem:[%s3119_s1 + $0x8] sm:$0xff]  ;;  %v52_v5 = vld [vmem:[%s3119_s1 + $0x10] sm:$0xff]  ;;  %v1810_v6 = vmov 3   ;;  %v1811_v7 = vmov 0   ;;  %v54_v8 = vld [vmem:[%s3120_s2] sm:$0xff]  ;;  %vm991_vm0 = vcmask 130048  }
  0x15   :  { %520 = vperm.xlu0 %1749, %v50_v2   ;;  %324 = vperm.xlu1 %1748, %v50_v2   ;;  %v57_v9 = vld [vmem:[%s3120_s2 + $0x18] sm:$0xff]  ;;  %v55_v10 = vld [vmem:[%s3120_s2 + $0x8] sm:$0xff]  ;;  %v56_v11 = vld [vmem:[%s3120_s2 + $0x10] sm:$0xff]  ;;  %v1883_v13 = vshrl.u32 %v3124_v12, 7  ;;  %vm1310_vm1 = vcmask 130112   ;;  %vm1317_vm2 = vcmask 195712  }
  0x16   :  { %v35_v15 = vld [vmem:[%s3118_s0] sm:$0xf]  ;;  %v36_v16 = vld [vmem:[%s3118_s0 + $0x4] sm:$0xf]  ;;  %v37_v18 = vld [vmem:[%s3118_s0 + $0x8] sm:$0xf] }
  0x17   :  { %3188 = vst [vmem:[#allocation8_spill] sm:$0xff] %v1883_v13  ;;  %v1886_v14 = vsub.s32 1, %v1883_v13  ;;  %v1895_v17 = vsub.s32 2, %v1883_v13  ;;  %v38_v19 = vld [vmem:[%s3118_s0 + $0xc] sm:$0xf]  ;;  %v1904_v20 = vsub.s32 0, %v1883_v13 }
  0x18   :  { %v43_v21 = vld [vmem:[%s3118_s0 + $0x20] sm:$0xf]  ;;  %v44_v23 = vld [vmem:[%s3118_s0 + $0x24] sm:$0xf]  ;;  %v1916_v24 = vsub.s32 3, %v1883_v13  ;;  %vm1324_vm3 = vcmask 261312  }
  0x19   :  { %532 = vperm.xlu0 %1749, %v53_v3   ;;  %328 = vperm.xlu1 %1748, %v51_v4   ;;  %3189 = vst [vmem:[#allocation9_spill] sm:$0xff] %v1895_v17  ;;  %3190 = vst [vmem:[#allocation10_spill] sm:$0xff] %v1904_v20  ;;  %v1910_v22 = vrot.slane %v35_v15, %v1886_v14  ;;  %v1919_v25 = vrot.slane %v36_v16, %v1886_v14  ;;  %v39_v36 = vld [vmem:[%s3118_s0 + $0x10] sm:$0xf]  ;;  %v45_v41 = vld [vmem:[%s3118_s0 + $0x28] sm:$0xf] }
  0x1a   :  { %3191 = vst [vmem:[#allocation11_spill] sm:$0xff] %v1916_v24  ;;  %v1922_v26 = vrot.slane %v37_v18, %v1886_v14  ;;  %v1925_v27 = vrot.slane %v38_v19, %v1886_v14  ;;  %v1928_v28 = vrot.slane %v35_v15, %v1895_v17  ;;  %v1931_v29 = vrot.slane %v36_v16, %v1895_v17  ;;  %v40_v46 = vld [vmem:[%s3118_s0 + $0x14] sm:$0xf]  ;;  %v46_v51 = vld [vmem:[%s3118_s0 + $0x2c] sm:$0xf]  ;;  %s1812_s6 = smov [#allocation5]  }
  0x1b   :  { %v1934_v30 = vrot.slane %v37_v18, %v1895_v17  ;;  %v1937_v31 = vrot.slane %v43_v21, %v1886_v14  ;;  %v1940_v32 = vrot.slane %v35_v15, %v1904_v20  ;;  %v1943_v33 = vrot.slane %v38_v19, %v1895_v17  ;;  %v41_v56 = vld [vmem:[%s3118_s0 + $0x18] sm:$0xf]  ;;  %v47_v61 = vld [vmem:[%s3118_s0 + $0x30] sm:$0xf]  ;;  %s1700_s7 = sshll.u32 %s1812_s6, 4  ;;  %s1701_s7 = int_to_ptr.vmem [resolvable:$true] %s1700_s7 }
  0x1c   :  { %v1946_v34 = vrot.slane %v43_v21, %v1895_v17  ;;  %v1949_v35 = vrot.slane %v44_v23, %v1886_v14  ;;  %v1955_v37 = vrot.slane %v36_v16, %v1904_v20  ;;  %v1958_v38 = vrot.slane %v37_v18, %v1904_v20  ;;  %s1779_s8 = scalar_lea.vmem %s1701_s7, 256  ;;  %p1784_p9 = scmp.lt.s32.totalorder %s1701_s7, %s1701_s7 }
  0x1d   :  { %1752 = vset.pattern.permute.xlu0 %v1810_v6  ;;  %332 = vperm.xlu1 %1748, %v52_v5   ;;  %v1961_v39 = vrot.slane %v38_v19, %v1904_v20  ;;  %v1964_v40 = vrot.slane %v43_v21, %v1904_v20  ;;  %v1970_v42 = vrot.slane %v35_v15, %v1916_v24  ;;  %v49_v15 = vld [vmem:[%s3118_s0 + $0x38] sm:$0xf]  ;;  %vm1592_vm4 = vcmask 1041409   ;;  %p1780_p8 = scmp.ne.s32.totalorder %s1701_s7, %s1779_s8  ;;  %p1785_p10 = scmp.lt.s32.totalorder %s1779_s8, %s1779_s8 }
  0x1e   :  { %720 = vperm.xlu0 %1752, %v51_v4   ;;  %3192 = vst [vmem:[#allocation12_spill] sm:$0xff] %v1946_v34  ;;  %v1973_v43 = vrot.slane %v36_v16, %v1916_v24  ;;  %v1976_v44 = vrot.slane %v37_v18, %v1916_v24  ;;  %v1979_v45 = vrot.slane %v38_v19, %v1916_v24  ;;  %vm1594_vm5 = vcmask 1042434  }
  0x1f   :  { %3193 = vst [vmem:[#allocation13_spill] sm:$0xff] %v1964_v40  ;;  %v1985_v47 = vrot.slane %v43_v21, %v1916_v24  ;;  %v1988_v48 = vrot.slane %v44_v23, %v1904_v20  ;;  %v1991_v49 = vrot.slane %v44_v23, %v1895_v17  ;;  %v1994_v50 = vrot.slane %v39_v36, %v1886_v14  ;;  %p1786_p11 = por %p1785_p10, %p1784_p9 }
  0x20   :  { %v2000_v52 = vrot.slane %v44_v23, %v1916_v24  ;;  %v2003_v53 = vrot.slane %v39_v36, %v1904_v20  ;;  %v2006_v54 = vrot.slane %v39_v36, %v1895_v17  ;;  %v2009_v55 = vrot.slane %v45_v41, %v1886_v14 }
  0x21   :  { %336 = vperm.xlu1 %1748, %v53_v3   ;;  %3194 = vst [vmem:[#allocation14_spill] sm:$0xff] %v1994_v50  ;;  %v2015_v57 = vrot.slane %v39_v36, %v1916_v24  ;;  %v2018_v58 = vrot.slane %v45_v41, %v1904_v20  ;;  %v2021_v59 = vrot.slane %v45_v41, %v1895_v17  ;;  %vm1596_vm6 = vcmask 1043459   ;;  %p1787_p12 = pnand %p1786_p11, %p1780_p8 }
  0x22   :  { %1753 = vset.pattern.permute.xlu0 %v1811_v7  ;;  %3195 = vst [vmem:[#allocation15_spill] sm:$0xff] %v2006_v54  ;;  %3196 = vst [vmem:[#allocation16_spill] sm:$0xff] %v2009_v55  ;;  %v2024_v60 = vrot.slane %v40_v46, %v1886_v14  ;;  %v2030_v62 = vrot.slane %v45_v41, %v1916_v24  ;;  %v2033_v63 = vrot.slane %v40_v46, %v1904_v20  ;;  %vm1598_vm7 = vcmask 1044484  }
  0x23   :  { %125 = vperm.xlu0 %1753, %v50_v2   ;;  %3197 = vst [vmem:[#allocation17_spill] sm:$0xff] %v2015_v57  ;;  %3198 = vst [vmem:[#allocation18_spill] sm:$0xff] %v2021_v59  ;;  %v2039_v1 = vrot.slane %v46_v51, %v1886_v14  ;;  %v2079_v19 = vrot.slane %v41_v56, %v1916_v24  ;;  %v2082_v21 = vrot.slane %v47_v61, %v1904_v20  ;;  %vm1600_vm8 = vcmask 1045509  }
  0x24   :  { %3199 = vst [vmem:[#allocation19_spill] sm:$0xff] %v2024_v60  ;;  %3200 = vst [vmem:[#allocation20_spill] sm:$0xff] %v2030_v62  ;;  %v2085_v23 = vrot.slane %v47_v61, %v1895_v17  ;;  %v2091_v41 = vrot.slane %v47_v61, %v1916_v24  ;;  %vm1602_vm9 = vcmask 1046534   ;;  %vm1604_vm10 = vcmask 1047559  }
  0x25   :  { %1750 = vset.pattern.permute.xlu1 %v1808_v0  ;;  %3201 = vst [vmem:[#allocation21_spill] sm:$0xff] %v2033_v63  ;;  %v2036_v0 = vrot.slane %v40_v46, %v1895_v17  ;;  %3203 = vst [vmem:[#allocation23_spill] sm:$0xff] %v2039_v1  ;;  %vm1612_vm11 = vcmask 261120   ;;  %vm1693_vm12 = vcmask 260096  }
  0x26   :  { %524 = vperm.xlu1 %1750, %v51_v4   ;;  %3214 = vst [vmem:[#allocation34_spill] sm:$0xff] %v2079_v19  ;;  %3215 = vst [vmem:[#allocation35_spill] sm:$0xff] %v2082_v21 }
  0x27   :  { %130 = vperm.xlu0 %1753, %v51_v4   ;;  %3202 = vst [vmem:[#allocation22_spill] sm:$0xff] %v2036_v0  ;;  %v2048_v4 = vrot.slane %v46_v51, %v1904_v20  ;;  %3216 = vst [vmem:[#allocation36_spill] sm:$0xff] %v2085_v23 }
  0x28   :  { %3218 = vst [vmem:[#allocation38_spill] sm:$0xff] %v2091_v41 }
  0x29   :  { %3205 = vst [vmem:[#allocation25_spill] sm:$0xff] %v2048_v4 }
  0x2a   :  { %528 = vperm.xlu1 %1750, %v52_v5  }
  0x2b   :  { %135 = vperm.xlu0 %1753, %v52_v5  }
  0x2e   :  { %1751 = vset.pattern.permute.xlu1 %v1810_v6  ;;  %v2054_v6 = vrot.slane %v41_v56, %v1886_v14 }
  0x2f   :  { %140 = vperm.xlu0 %1753, %v53_v3   ;;  %716 = vperm.xlu1 %1751, %v50_v2   ;;  %v42_v2 = vld [vmem:[%s3118_s0 + $0x1c] sm:$0xf] }
  0x30   :  { %3207 = vst [vmem:[#allocation27_spill] sm:$0xff] %v2054_v6  ;;  %v2088_v36 = vrot.slane %v42_v2, %v1886_v14  ;;  %v2103_v12 = vrot.slane %v42_v2, %v1916_v24 }
  0x32   :  { %3217 = vst [vmem:[#allocation37_spill] sm:$0xff] %v2088_v36  ;;  %3222 = vst [vmem:[#allocation42_spill] sm:$0xff] %v2103_v12 }
  0x33   :  { %853 = vperm.xlu0 %1753, %v54_v8   ;;  %724 = vperm.xlu1 %1751, %v52_v5   ;;  %v2051_v5 = vrot.slane %v46_v51, %v1895_v17  ;;  %v2060_v8 = vrot.slane %v46_v51, %v1916_v24  ;;  %v2097_v51 = vrot.slane %v42_v2, %v1895_v17 }
  0x35   :  { %3206 = vst [vmem:[#allocation26_spill] sm:$0xff] %v2051_v5  ;;  %3208 = vst [vmem:[#allocation28_spill] sm:$0xff] %v2060_v8 }
  0x36   :  { %3220 = vst [vmem:[#allocation40_spill] sm:$0xff] %v2097_v51 }
  0x37   :  { %868 = vperm.xlu0 %1753, %v57_v9   ;;  %728 = vperm.xlu1 %1751, %v53_v3   ;;  %v2045_v3 = vrot.slane %v40_v46, %v1916_v24  ;;  %v2063_v9 = vrot.slane %v41_v56, %v1904_v20  ;;  %v2094_v46 = vrot.slane %v42_v2, %v1904_v20 }
  0x39   :  { %3204 = vst [vmem:[#allocation24_spill] sm:$0xff] %v2045_v3  ;;  %3209 = vst [vmem:[#allocation29_spill] sm:$0xff] %v2063_v9 }
  0x3a   :  { %3219 = vst [vmem:[#allocation39_spill] sm:$0xff] %v2094_v46 }
  0x3b   :  { %1754 = vset.pattern.permute.xlu1 %v1811_v7  ;;  %v48_v7 = vld [vmem:[%s3118_s0 + $0x34] sm:$0xf] }
  0x3c   :  { %858 = vperm.xlu1 %1754, %v55_v10   ;;  %v2066_v10 = vrot.slane %v41_v56, %v1895_v17  ;;  %v2100_v56 = vrot.slane %v48_v7, %v1886_v14  ;;  %v2106_v13 = vrot.slane %v48_v7, %v1904_v20  ;;  %v2109_v36 = vrot.slane %v48_v7, %v1895_v17 }
  0x3e   :  { %3210 = vst [vmem:[#allocation30_spill] sm:$0xff] %v2066_v10  ;;  %3221 = vst [vmem:[#allocation41_spill] sm:$0xff] %v2100_v56 }
  0x3f   :  { %3223 = vst [vmem:[#allocation43_spill] sm:$0xff] %v2106_v13  ;;  %3224 = vst [vmem:[#allocation44_spill] sm:$0xff] %v2109_v36 }
  0x40   :  { %863 = vperm.xlu1 %1754, %v56_v11   ;;  %v2069_v11 = vrot.slane %v47_v61, %v1886_v14  ;;  %v2112_v61 = vrot.slane %v49_v15, %v1886_v14 }
  0x42   :  { %3211 = vst [vmem:[#allocation31_spill] sm:$0xff] %v2069_v11  ;;  %3225 = vst [vmem:[#allocation45_spill] sm:$0xff] %v2112_v61 }
  0x94   :  { %v2074_v16 = vpop.permute.xlu1 %324  ;;  %v2076_v18 = vpop.permute.xlu0 %520 }
  0x95   :  { %3212 = vst [vmem:[#allocation32_spill] sm:$0xff] %v2074_v16  ;;  %3213 = vst [vmem:[#allocation33_spill] sm:$0xff] %v2076_v18  ;;  %v2116_v46 = vmul.f32 %v2074_v16, %v1910_v22  ;;  %v2120_v51 = vmul.f32 %v2076_v18, %v1928_v28  ;;  %v2124_v2 = vmul.f32 %v2074_v16, %v1919_v25 }
  0x96   :  { %v2128_v20 = vmul.f32 %v2076_v18, %v1931_v29  ;;  %v2136_v15 = vmul.f32 %v2074_v16, %v1922_v26  ;;  %v2140_v17 = vmul.f32 %v2076_v18, %v1934_v30  ;;  %v2144_v61 = vmul.f32 %v2074_v16, %v1925_v27 }
  0x97   :  { %v2148_v24 = vmul.f32 %v2076_v18, %v1943_v33  ;;  %v2152_v36 = vmul.f32 %v2074_v16, %v1937_v31  ;;  %v2156_v56 = vmul.f32 %v2076_v18, %v1946_v34  ;;  %v2160_v13 = vmul.f32 %v2074_v16, %v1949_v35 }
  0x98   :  { %v2130_v7 = vpop.permute.xlu1 %328  ;;  %v2132_v14 = vpop.permute.xlu0 %532  ;;  %v2164_v12 = vmul.f32 %v2076_v18, %v1991_v49  ;;  %v2168_v41 = vmul.f32 %v2074_v16, %v1994_v50  ;;  %v2172_v23 = vmul.f32 %v2076_v18, %v2006_v54  ;;  %v2176_v11 = vmul.f32 %v2074_v16, %v2009_v55 }
  0x99   :  { %3226 = vst [vmem:[#allocation46_spill] sm:$0xff] %v2130_v7  ;;  %3227 = vst [vmem:[#allocation47_spill] sm:$0xff] %v2132_v14  ;;  %v2180_v21 = vmul.f32 %v2076_v18, %v2021_v59  ;;  %v2184_v19 = vmul.f32 %v2130_v7, %v1910_v22  ;;  %v2188_v10 = vmul.f32 %v2130_v7, %v1919_v25 }
  0x9a   :  { %3228 = vst [vmem:[#allocation48_spill] sm:$0xff] %v2168_v41  ;;  %3229 = vst [vmem:[#allocation49_spill] sm:$0xff] %v2172_v23  ;;  %v2192_v6 = vmul.f32 %v2130_v7, %v1922_v26  ;;  %v2196_v9 = vmul.f32 %v2132_v14, %v1931_v29  ;;  %v2202_v5 = vmul.f32 %v2132_v14, %v1928_v28 }
  0x9b   :  { %3230 = vst [vmem:[#allocation50_spill] sm:$0xff] %v2176_v11  ;;  %3231 = vst [vmem:[#allocation51_spill] sm:$0xff] %v2180_v21  ;;  %v2206_v1 = vmul.f32 %v2130_v7, %v1925_v27  ;;  %v2210_v4 = vmul.f32 %v2130_v7, %v1937_v31  ;;  %v2214_v63 = vmul.f32 %v2132_v14, %v1934_v30 }
  0x9c   :  { %v2198_v8 = vpop.permute.xlu1 %332  ;;  %v2220_v21 = vmul.f32 %v2130_v7, %v1949_v35  ;;  %v2224_v54 = vmul.f32 %v2130_v7, %v1994_v50  ;;  %v2228_v11 = vmul.f32 %v2132_v14, %v1943_v33  ;;  %v2232_v23 = vmul.f32 %v2130_v7, %v2009_v55 }
  0x9d   :  { %3232 = vst [vmem:[#allocation52_spill] sm:$0xff] %v2198_v8  ;;  %3233 = vst [vmem:[#allocation53_spill] sm:$0xff] %v2210_v4  ;;  %v2216_v59 = vpop.permute.xlu0 %720  ;;  %v2240_v41 = vmul.f32 %v2076_v18, %v2036_v0  ;;  %v2260_v18 = vmul.f32 %v2198_v8, %v1922_v26  ;;  %v2264_v0 = vmul.f32 %v2198_v8, %v1925_v27 }
  0x9e   :  { %3234 = vst [vmem:[#allocation54_spill] sm:$0xff] %v2214_v63  ;;  %3235 = vst [vmem:[#allocation55_spill] sm:$0xff] %v2216_v59  ;;  %v2236_v63 = vmul.f32 %v2074_v16, %v2024_v60  ;;  %v2256_v16 = vmul.f32 %v2198_v8, %v1910_v22 }
  0x9f   :  { %3236 = vst [vmem:[#allocation56_spill] sm:$0xff] %v2220_v21  ;;  %3237 = vst [vmem:[#allocation57_spill] sm:$0xff] %v2224_v54  ;;  %v2244_v21 = vmul.f32 %v2132_v14, %v1946_v34  ;;  %v2248_v54 = vmul.f32 %v2130_v7, %v2024_v60  ;;  %v2270_v60 = vmul.f32 %v2216_v59, %v1970_v42 }
  0xa0   :  { %3238 = vst [vmem:[#allocation58_spill] sm:$0xff] %v2228_v11  ;;  %3239 = vst [vmem:[#allocation59_spill] sm:$0xff] %v2232_v23  ;;  %v2252_v11 = vmul.f32 %v2198_v8, %v1919_v25  ;;  %v2274_v7 = vmul.f32 %v2216_v59, %v1973_v43  ;;  %v2290_v23 = vmul.f32 %v2216_v59, %v2000_v52 }
  0xa1   :  { %3240 = vst [vmem:[#allocation60_spill] sm:$0xff] %v2236_v63  ;;  %3241 = vst [vmem:[#allocation61_spill] sm:$0xff] %v2240_v41  ;;  %v2282_v41 = vmul.f32 %v2216_v59, %v1979_v45  ;;  %v2286_v63 = vmul.f32 %v2216_v59, %v1985_v47  ;;  %v2298_v34 = vmul.f32 %v2216_v59, %v2015_v57 }
  0xa2   :  { %3242 = vst [vmem:[#allocation62_spill] sm:$0xff] %v2244_v21  ;;  %3243 = vst [vmem:[#allocation63_spill] sm:$0xff] %v2248_v54  ;;  %v2266_v21 = vpop.permute.xlu1 %336  ;;  %v2278_v54 = vmul.f32 %v2216_v59, %v1976_v44  ;;  %v2300_v4 = vpop.permute.xlu0 %125 }
  0xa3   :  { %3244 = vst [vmem:[#allocation64_spill] sm:$0xff] %v2264_v0  ;;  %3245 = vst [vmem:[#allocation65_spill] sm:$0xff] %v2266_v21  ;;  %v2294_v0 = vmul.f32 %v2198_v8, %v1937_v31  ;;  %v147_v57 = vmul.f32 %v2300_v4, %v1955_v37 }
  0xa4   :  { %3246 = vst [vmem:[#allocation66_spill] sm:$0xff] %v2282_v41  ;;  %3247 = vst [vmem:[#allocation67_spill] sm:$0xff] %v2286_v63  ;;  %v2304_v41 = vmul.f32 %v2198_v8, %v1949_v35  ;;  %v2308_v63 = vmul.f32 %v2216_v59, %v2030_v62  ;;  %v2352_v62 = vmul.f32 %v2198_v8, %v2009_v55 }
  0xa5   :  { %3248 = vst [vmem:[#allocation68_spill] sm:$0xff] %v2290_v23  ;;  %3249 = vst [vmem:[#allocation69_spill] sm:$0xff] %v2294_v0  ;;  %v2312_v23 = vmul.f32 %v2198_v8, %v1994_v50  ;;  %v2316_v0 = vmul.f32 %v2216_v59, %v2045_v3  ;;  %v2330_v50 = vmul.f32 %v2266_v21, %v1910_v22 }
  0xa6   :  { %3250 = vst [vmem:[#allocation70_spill] sm:$0xff] %v2298_v34  ;;  %3251 = vst [vmem:[#allocation71_spill] sm:$0xff] %v2300_v4  ;;  %v143_v34 = vmul.f32 %v2300_v4, %v1940_v32  ;;  %v155_v59 = vmul.f32 %v2300_v4, %v1961_v39  ;;  %v2340_v3 = vpop.permute.xlu1 %524  ;;  %v2348_v22 = vmul.f32 %v2266_v21, %v1937_v31 }
  0xa7   :  { %3252 = vst [vmem:[#allocation72_spill] sm:$0xff] %v2304_v41  ;;  %3253 = vst [vmem:[#allocation73_spill] sm:$0xff] %v2308_v63  ;;  %v151_v41 = vmul.f32 %v2300_v4, %v1958_v38  ;;  %v2326_v63 = vmul.f32 %v2266_v21, %v1919_v25  ;;  %v2344_v25 = vmul.f32 %v2266_v21, %v1925_v27 }
  0xa8   :  { %3254 = vst [vmem:[#allocation74_spill] sm:$0xff] %v2312_v23  ;;  %3255 = vst [vmem:[#allocation75_spill] sm:$0xff] %v2316_v0  ;;  %v175_v0 = vmul.f32 %v2300_v4, %v1964_v40  ;;  %v2338_v23 = vmul.f32 %v2266_v21, %v1922_v26  ;;  %v2356_v40 = vmul.f32 %v2266_v21, %v1949_v35  ;;  %v2358_v26 = vpop.permute.xlu0 %130 }
  0xa9   :  { %3257 = vst [vmem:[#allocation77_spill] sm:$0xff] %v2344_v25  ;;  %3258 = vst [vmem:[#allocation78_spill] sm:$0xff] %v2348_v22  ;;  %v179_v27 = vmul.f32 %v2300_v4, %v1988_v48  ;;  %v2365_v25 = vmul.f32 %v2300_v4, %v2003_v53  ;;  %v2369_v31 = vmul.f32 %v2132_v14, %v1991_v49 }
  0xaa   :  { %3256 = vst [vmem:[#allocation76_spill] sm:$0xff] %v2338_v23  ;;  %3259 = vst [vmem:[#allocation79_spill] sm:$0xff] %v2352_v62  ;;  %v399_v23 = vadd.f32 %v2116_v46, %v143_v34  ;;  %v144_v55 = vmul.f32 %v2358_v26, %v1940_v32  ;;  %v148_v35 = vmul.f32 %v2358_v26, %v1955_v37 }
  0xab   :  { %3260 = vst [vmem:[#allocation80_spill] sm:$0xff] %v2356_v40  ;;  %3261 = vst [vmem:[#allocation81_spill] sm:$0xff] %v2369_v31  ;;  %v403_v21 = vadd.f32 %v2124_v2, %v147_v57  ;;  %v407_v34 = vadd.f32 %v2136_v15, %v151_v41  ;;  %v152_v46 = vmul.f32 %v2358_v26, %v1958_v38  ;;  %v2385_v31 = vpop.permute.xlu1 %528 }
  0xac   :  { %v411_v8 = vadd.f32 %v2144_v61, %v155_v59  ;;  %v431_v40 = vadd.f32 %v2152_v36, %v175_v0  ;;  %v2383_v14 = vmul.f32 %v2300_v4, %v2018_v58  ;;  %v400_v62 = vadd.f32 %v2184_v19, %v144_v55  ;;  %v2393_v15 = vpop.permute.xlu0 %135 }
  0xad   :  { %v536_v57 = vmul.f32 %v2340_v3, %v1928_v28  ;;  %v404_v41 = vadd.f32 %v2188_v10, %v148_v35  ;;  %v540_v2 = vmul.f32 %v2340_v3, %v1931_v29  ;;  %v595_v59 = vadd.f32 %v2120_v51, %v399_v23 }
  0xae   :  { %v408_v0 = vadd.f32 %v2192_v6, %v152_v46  ;;  %v544_v36 = vmul.f32 %v2340_v3, %v1934_v30  ;;  %v156_v55 = vmul.f32 %v2358_v26, %v1961_v39  ;;  %v599_v22 = vadd.f32 %v2128_v20, %v403_v21 }
  0xaf   :  { %v596_v19 = vadd.f32 %v536_v57, %v400_v62  ;;  %v600_v61 = vadd.f32 %v540_v2, %v404_v41  ;;  %v603_v10 = vadd.f32 %v2140_v17, %v407_v34  ;;  %v541_v35 = vmul.f32 %v2385_v31, %v1931_v29 }
  0xb0   :  { %v607_v23 = vadd.f32 %v2148_v24, %v411_v8  ;;  %v627_v6 = vadd.f32 %v2156_v56, %v431_v40  ;;  %v548_v51 = vmul.f32 %v2340_v3, %v1943_v33  ;;  %v149_v46 = vmul.f32 %v2393_v15, %v1955_v37  ;;  %v2417_v29 = vpop.permute.xlu0 %140  ;;  %v2419_v24 = vpop.permute.xlu1 %716 }
  0xb1   :  { %v145_v62 = vmul.f32 %v2393_v15, %v1940_v32  ;;  %v537_v17 = vmul.f32 %v2385_v31, %v1928_v28  ;;  %v545_v20 = vmul.f32 %v2385_v31, %v1934_v30  ;;  %v604_v40 = vadd.f32 %v544_v36, %v408_v0 }
  0xb2   :  { %v153_v8 = vmul.f32 %v2393_v15, %v1958_v38  ;;  %v412_v21 = vadd.f32 %v2206_v1, %v156_v55  ;;  %v435_v56 = vadd.f32 %v2160_v13, %v179_v27  ;;  %v731_v34 = vmul.f32 %v2419_v24, %v1970_v42 }
  0xb3   :  { %v792_v28 = vadd.f32 %v2270_v60, %v596_v19  ;;  %v796_v57 = vadd.f32 %v2274_v7, %v600_v61  ;;  %v735_v30 = vmul.f32 %v2419_v24, %v1973_v43  ;;  %v739_v41 = vmul.f32 %v2419_v24, %v1976_v44 }
  0xb4   :  { %v150_v2 = vmul.f32 %v2417_v29, %v1955_v37  ;;  %v146_v1 = vmul.f32 %v2417_v29, %v1940_v32  ;;  %v743_v13 = vmul.f32 %v2419_v24, %v1979_v45  ;;  %v791_v27 = vadd.f32 %v731_v34, %v595_v59  ;;  %v2442_v36 = vpop.permute.xlu0 %853  ;;  %v2444_v55 = vpop.permute.xlu1 %724 }
  0xb5   :  { %v795_v0 = vadd.f32 %v735_v30, %v599_v22  ;;  %v405_v60 = vadd.f32 %v2252_v11, %v149_v46  ;;  %v763_v7 = vmul.f32 %v2419_v24, %v1985_v47  ;;  %v799_v19 = vadd.f32 %v739_v41, %v603_v10 }
  0xb6   :  { %v406_v37 = vadd.f32 %v2326_v63, %v150_v2  ;;  %v402_v61 = vadd.f32 %v2330_v50, %v146_v1  ;;  %v803_v32 = vadd.f32 %v743_v13, %v607_v23  ;;  %v871_v4 = vadd.f32 %v2442_v36, %v791_v27 }
  0xb7   :  { %v875_v59 = vadd.f32 %v2442_v36, %v795_v0  ;;  %v401_v22 = vadd.f32 %v2256_v16, %v145_v62  ;;  %v800_v11 = vadd.f32 %v2278_v54, %v604_v40  ;;  %v879_v46 = vadd.f32 %v2442_v36, %v799_v19 }
  0xb8   :  { %v883_v34 = vadd.f32 %v2442_v36, %v803_v32  ;;  %v409_v30 = vadd.f32 %v2260_v18, %v153_v8  ;;  %v608_v10 = vadd.f32 %v548_v51, %v412_v21  ;;  %v931_v41 = vmax.f32 %v871_v4, 0.0  ;;  %v2460_v2 = vpop.permute.xlu1 %728 }
  0xb9   :  { %v737_v50 = vmul.f32 %v2444_v55, %v1973_v43  ;;  %v733_v63 = vmul.f32 %v2444_v55, %v1970_v42  ;;  %v602_v23 = vadd.f32 %v2196_v9, %v406_v37  ;;  %v935_v16 = vmax.f32 %v875_v59, 0.0  ;;  %v3262_v37 = vld [vmem:[#allocation13_spill] sm:$0xff] }
  0xba   :  { %v939_v54 = vmax.f32 %v879_v46, 0.0  ;;  %v598_v62 = vadd.f32 %v2202_v5, %v402_v61  ;;  %v823_v40 = vadd.f32 %v763_v7, %v627_v6  ;;  %v992_v1 = vsel %vm991_vm0, %v931_v41, 0.0 }
  0xbb   :  { %v738_v4 = vmul.f32 %v2460_v2, %v1973_v43  ;;  %v734_v18 = vmul.f32 %v2460_v2, %v1970_v42  ;;  %v943_v51 = vmax.f32 %v883_v34, 0.0  ;;  %993 = vadd.xlane.f32.xlu1 %v992_v1  ;;  %v601_v8 = vadd.f32 %v541_v35, %v405_v60  ;;  %v2474_v43 = vpop.permute.xlu0 %868  ;;  %v3265_v1 = vld [vmem:[#allocation12_spill] sm:$0xff] }
  0xbc   :  { %v597_v21 = vadd.f32 %v537_v17, %v401_v22  ;;  %v741_v9 = vmul.f32 %v2444_v55, %v1976_v44  ;;  %v631_v13 = vadd.f32 %v2164_v12, %v435_v56  ;;  %v903_v6 = vadd.f32 %v2442_v36, %v823_v40  ;;  %v2478_v17 = vpop.permute.xlu1 %858  ;;  %v3263_v22 = vld [vmem:[#allocation66_spill] sm:$0xff] }
  0xbd   :  { %v798_v27 = vadd.f32 %v738_v4, %v602_v23  ;;  %v794_v5 = vadd.f32 %v734_v18, %v598_v62  ;;  %v767_v0 = vmul.f32 %v2419_v24, %v2000_v52  ;;  %v797_v7 = vadd.f32 %v737_v50, %v601_v8 }
  0xbe   :  { %v793_v42 = vadd.f32 %v733_v63, %v597_v21  ;;  %v605_v19 = vadd.f32 %v545_v20, %v409_v30  ;;  %v176_v35 = vmul.f32 %v2358_v26, %v3262_v37  ;;  %v1004_v60 = vsel %vm991_vm0, %v935_v16, 0.0  ;;  %v3264_v16 = vld [vmem:[#allocation53_spill] sm:$0xff] }
  0xbf   :  { %v2482_v12 = vsel %vm991_vm0, %v939_v54, 0.0  ;;  %v878_v56 = vadd.f32 %v2474_v43, %v798_v27  ;;  %v2486_v61 = vsel %vm991_vm0, %v943_v51, 0.0  ;;  %v872_v32 = vadd.f32 %v2478_v17, %v792_v28 }
  0xc0   :  { %v876_v59 = vadd.f32 %v2478_v17, %v796_v57  ;;  %v801_v20 = vadd.f32 %v741_v9, %v605_v19  ;;  %v804_v46 = vadd.f32 %v3263_v22, %v608_v10  ;;  %v880_v34 = vadd.f32 %v2478_v17, %v800_v11  ;;  %v2496_v40 = vpop.permute.xlu1 %863 }
  0xc1   :  { %v874_v30 = vadd.f32 %v2474_v43, %v794_v5  ;;  %v963_v41 = vmax.f32 %v903_v6, 0.0  ;;  %v827_v50 = vadd.f32 %v767_v0, %v631_v13  ;;  %v932_v63 = vmax.f32 %v872_v32, 0.0  ;;  %v3266_v6 = vld [vmem:[#allocation76_spill] sm:$0xff] }
  0xc2   :  { %v936_v23 = vmax.f32 %v876_v59, 0.0  ;;  %v432_v54 = vadd.f32 %v3264_v16, %v176_v35  ;;  %v154_v62 = vmul.f32 %v2417_v29, %v1958_v38  ;;  %v938_v28 = vmax.f32 %v878_v56, 0.0  ;;  %v3268_v59 = vld [vmem:[#allocation67_spill] sm:$0xff] }
  0xc3   :  { %v884_v57 = vadd.f32 %v2478_v17, %v804_v46  ;;  %v568_v10 = vmul.f32 %v2340_v3, %v3265_v1  ;;  %v742_v11 = vmul.f32 %v2460_v2, %v1976_v44  ;;  %v995_v4 = vsel %vm991_vm0, %v932_v63, 0.0  ;;  %v3269_v46 = vld [vmem:[#allocation54_spill] sm:$0xff] }
  0xc4   :  { %v1007_v18 = vsel %vm991_vm0, %v936_v23, 0.0  ;;  %v877_v51 = vadd.f32 %v2496_v40, %v797_v7  ;;  %v873_v8 = vadd.f32 %v2496_v40, %v793_v42  ;;  %996 = vadd.xlane.f32.xlu0 %v995_v4  ;;  %v940_v38 = vmax.f32 %v880_v34, 0.0  ;;  %v3267_v42 = vld [vmem:[#allocation48_spill] sm:$0xff]  ;;  %v3271_v23 = vld [vmem:[#allocation49_spill] sm:$0xff] }
  0xc5   :  { %1008 = vadd.xlane.f32.xlu1 %v1007_v18  ;;  %v934_v21 = vmax.f32 %v874_v30, 0.0  ;;  %v2508_v9 = vsel %vm991_vm0, %v963_v41, 0.0  ;;  %v907_v13 = vadd.f32 %v2442_v36, %v827_v50  ;;  %v628_v44 = vadd.f32 %v568_v10, %v432_v54  ;;  %v3270_v50 = vld [vmem:[#allocation56_spill] sm:$0xff]  ;;  %v3272_v54 = vld [vmem:[#allocation17_spill] sm:$0xff] }
  0xc6   :  { %v937_v27 = vmax.f32 %v877_v51, 0.0  ;;  %v933_v5 = vmax.f32 %v873_v8, 0.0  ;;  %v410_v0 = vadd.f32 %v3266_v6, %v154_v62  ;;  %v1013_v19 = vsel %vm991_vm0, %v938_v28, 0.0 }
  0xc7   :  { %v944_v35 = vmax.f32 %v884_v57, 0.0  ;;  %v180_v7 = vmul.f32 %v2358_v26, %v1988_v48  ;;  %v415_v56 = vadd.f32 %v3267_v42, %v2365_v25  ;;  %v824_v22 = vadd.f32 %v3268_v59, %v628_v44  ;;  %v3274_v44 = vld [vmem:[#allocation68_spill] sm:$0xff] }
  0xc8   :  { %v1010_v32 = vsel %vm991_vm0, %v937_v27, 0.0  ;;  %v606_v34 = vadd.f32 %v3269_v46, %v410_v0  ;;  %v572_v30 = vmul.f32 %v2340_v3, %v1991_v49  ;;  %1005 = vadd.xlane.f32.xlu0 %v1004_v60  ;;  %v1019_v41 = vsel %vm991_vm0, %v940_v38, 0.0  ;;  %v3273_v38 = vld [vmem:[#allocation64_spill] sm:$0xff] }
  0xc9   :  { %1011 = vadd.xlane.f32.xlu1 %v1010_v32  ;;  %v436_v63 = vadd.f32 %v3270_v50, %v180_v7  ;;  %v611_v16 = vadd.f32 %v3271_v23, %v415_v56  ;;  %v747_v25 = vmul.f32 %v2419_v24, %v3272_v54  ;;  %v998_v62 = vsel %vm991_vm0, %v933_v5, 0.0  ;;  %v3275_v7 = vld [vmem:[#allocation69_spill] sm:$0xff] }
  0xca   :  { %v881_v28 = vadd.f32 %v2496_v40, %v801_v20  ;;  %v802_v57 = vadd.f32 %v742_v11, %v606_v34  ;;  %v157_v10 = vmul.f32 %v2393_v15, %v1961_v39  ;;  %v904_v60 = vadd.f32 %v2478_v17, %v824_v22  ;;  %v3277_v23 = vld [vmem:[#allocation57_spill] sm:$0xff] }
  0xcb   :  { %v632_v4 = vadd.f32 %v572_v30, %v436_v63  ;;  %v807_v18 = vadd.f32 %v747_v25, %v611_v16  ;;  %v177_v51 = vmul.f32 %v2393_v15, %v3262_v37  ;;  %v549_v5 = vmul.f32 %v2385_v31, %v1943_v33  ;;  %v3276_v63 = vld [vmem:[#allocation50_spill] sm:$0xff]  ;;  %v3278_v25 = vld [vmem:[#allocation15_spill] sm:$0xff] }
  0xcc   :  { %v882_v8 = vadd.f32 %v2474_v43, %v802_v57  ;;  %v413_v27 = vadd.f32 %v3273_v38, %v157_v10  ;;  %v745_v20 = vmul.f32 %v2444_v55, %v1979_v45  ;;  %999 = vadd.xlane.f32.xlu0 %v998_v62  ;;  %v1001_v11 = vsel %vm991_vm0, %v934_v21, 0.0  ;;  %v3279_v57 = vld [vmem:[#allocation51_spill] sm:$0xff] }
  0xcd   :  { %1020 = vadd.xlane.f32.xlu1 %v1019_v41  ;;  %v828_v6 = vadd.f32 %v3274_v44, %v632_v4  ;;  %v887_v0 = vadd.f32 %v2442_v36, %v807_v18  ;;  %v433_v42 = vadd.f32 %v3275_v7, %v177_v51  ;;  %v941_v56 = vmax.f32 %v881_v28, 0.0 }
  0xce   :  { %v2545_v32 = vsel %vm991_vm0, %v944_v35, 0.0  ;;  %v967_v59 = vmax.f32 %v907_v13, 0.0  ;;  %v569_v33 = vmul.f32 %v2385_v31, %v3265_v1  ;;  %v964_v22 = vmax.f32 %v904_v60, 0.0  ;;  %v3280_v60 = vld [vmem:[#allocation20_spill] sm:$0xff] }
  0xcf   :  { %v908_v46 = vadd.f32 %v2478_v17, %v828_v6  ;;  %v609_v34 = vadd.f32 %v549_v5, %v413_v27  ;;  %v160_v21 = vmul.f32 %v2358_v26, %v2003_v53  ;;  %v942_v30 = vmax.f32 %v882_v8, 0.0  ;;  %v3281_v5 = vld [vmem:[#allocation72_spill] sm:$0xff] }
  0xd0   :  { %v629_v41 = vadd.f32 %v569_v33, %v433_v42  ;;  %v765_v50 = vmul.f32 %v2444_v55, %v1985_v47  ;;  %v439_v35 = vadd.f32 %v3276_v63, %v2383_v14  ;;  %1017 = vadd.xlane.f32.xlu0 %v2482_v12  ;;  %v947_v13 = vmax.f32 %v887_v0, 0.0  ;;  %v3286_v63 = vld [vmem:[#allocation21_spill] sm:$0xff] }
  0xd1   :  { %1014 = vadd.xlane.f32.xlu1 %v1013_v19  ;;  %v805_v1 = vadd.f32 %v745_v20, %v609_v34  ;;  %v416_v16 = vadd.f32 %v3277_v23, %v160_v21  ;;  %v552_v62 = vmul.f32 %v2340_v3, %v3278_v25  ;;  %v968_v28 = vmax.f32 %v908_v46, 0.0  ;;  %v3284_v21 = vld [vmem:[#allocation59_spill] sm:$0xff] }
  0xd2   :  { %v635_v10 = vadd.f32 %v3279_v57, %v439_v35  ;;  %v771_v4 = vmul.f32 %v2419_v24, %v3280_v60  ;;  %v181_v18 = vmul.f32 %v2393_v15, %v1988_v48  ;;  %v1022_v14 = vsel %vm991_vm0, %v941_v56, 0.0  ;;  %v3287_v35 = vld [vmem:[#allocation71_spill] sm:$0xff] }
  0xd3   :  { %v1100_v12 = vsel %vm991_vm0, %v967_v59, 0.0  ;;  %v1091_v19 = vsel %vm991_vm0, %v964_v22, 0.0  ;;  %v612_v51 = vadd.f32 %v552_v62, %v416_v16  ;;  %v885_v8 = vadd.f32 %v2496_v40, %v805_v1  ;;  %v3282_v59 = vld [vmem:[#allocation70_spill] sm:$0xff]  ;;  %v3283_v22 = vld [vmem:[#allocation77_spill] sm:$0xff] }
  0xd4   :  { %v825_v38 = vadd.f32 %v765_v50, %v629_v41  ;;  %v831_v27 = vadd.f32 %v771_v4, %v635_v10  ;;  %v437_v20 = vadd.f32 %v3281_v5, %v181_v18  ;;  %1002 = vadd.xlane.f32.xlu0 %v1001_v11  ;;  %v1025_v44 = vsel %vm991_vm0, %v942_v30, 0.0  ;;  %v3285_v41 = vld [vmem:[#allocation18_spill] sm:$0xff]  ;;  %v3289_v10 = vld [vmem:[#allocation60_spill] sm:$0xff]  ;;  %v3292_v5 = vld [vmem:[#allocation73_spill] sm:$0xff] }
  0xd5   :  { %1029 = vadd.xlane.f32.xlu1 %v2486_v61  ;;  %v573_v6 = vmul.f32 %v2385_v31, %v1991_v49  ;;  %v769_v0 = vmul.f32 %v2444_v55, %v2000_v52  ;;  %v158_v7 = vmul.f32 %v2417_v29, %v1961_v39  ;;  %v2579_v42 = vsel %vm991_vm0, %v968_v28, 0.0  ;;  %v3288_v16 = vld [vmem:[#allocation58_spill] sm:$0xff]  ;;  %v3290_v18 = vld [vmem:[#allocation24_spill] sm:$0xff] }
  0xd6   :  { %v2582_v56 = vsel %vm991_vm0, %v947_v13, 0.0  ;;  %v905_v11 = vadd.f32 %v2496_v40, %v825_v38  ;;  %v184_v61 = vmul.f32 %v2358_v26, %v2018_v58  ;;  %v808_v33 = vadd.f32 %v3282_v59, %v612_v51 }
  0xd7   :  { %v633_v49 = vadd.f32 %v573_v6, %v437_v20  ;;  %v414_v46 = vadd.f32 %v3283_v22, %v158_v7  ;;  %v746_v34 = vmul.f32 %v2460_v2, %v1979_v45  ;;  %v911_v39 = vadd.f32 %v2442_v36, %v831_v27  ;;  %v3293_v6 = vld [vmem:[#allocation61_spill] sm:$0xff] }
  0xd8   :  { %v440_v30 = vadd.f32 %v3284_v21, %v184_v61  ;;  %v576_v50 = vmul.f32 %v2340_v3, %v3285_v41  ;;  %v163_v13 = vmul.f32 %v3287_v35, %v3286_v63  ;;  %1023 = vadd.xlane.f32.xlu0 %v1022_v14  ;;  %v945_v1 = vmax.f32 %v885_v8, 0.0 }
  0xd9   :  { %1089 = vadd.xlane.f32.xlu1 %v2508_v9  ;;  %v829_v23 = vadd.f32 %v769_v0, %v633_v49  ;;  %v610_v62 = vadd.f32 %v3288_v16, %v414_v46  ;;  %v161_v45 = vmul.f32 %v2393_v15, %v2003_v53  ;;  %v888_v28 = vadd.f32 %v2478_v17, %v808_v33  ;;  %v3291_v9 = vld [vmem:[#allocation74_spill] sm:$0xff] }
  0xda   :  { %v636_v57 = vadd.f32 %v576_v50, %v440_v30  ;;  %v419_v4 = vadd.f32 %v3289_v10, %v163_v13  ;;  %v751_v51 = vmul.f32 %v2419_v24, %v3290_v18  ;;  %v965_v38 = vmax.f32 %v905_v11, 0.0  ;;  %v3294_v50 = vld [vmem:[#allocation78_spill] sm:$0xff] }
  0xdb   :  { %v909_v14 = vadd.f32 %v2496_v40, %v829_v23  ;;  %v806_v27 = vadd.f32 %v746_v34, %v610_v62  ;;  %v417_v8 = vadd.f32 %v3291_v9, %v161_v45  ;;  %v553_v7 = vmul.f32 %v2385_v31, %v3278_v25  ;;  %v3295_v62 = vld [vmem:[#allocation62_spill] sm:$0xff] }
  0xdc   :  { %v832_v20 = vadd.f32 %v3292_v5, %v636_v57  ;;  %v615_v0 = vadd.f32 %v3293_v6, %v419_v4  ;;  %v749_v61 = vmul.f32 %v2444_v55, %v3272_v54  ;;  %1032 = vadd.xlane.f32.xlu0 %v2545_v32  ;;  %v1034_v11 = vsel %vm991_vm0, %v945_v1, 0.0  ;;  %v3297_v10 = vld [vmem:[#allocation22_spill] sm:$0xff] }
  0xdd   :  { %1101 = vadd.xlane.f32.xlu1 %v1100_v12  ;;  %v971_v59 = vmax.f32 %v911_v39, 0.0  ;;  %v886_v33 = vadd.f32 %v2474_v43, %v806_v27  ;;  %v178_v49 = vmul.f32 %v2417_v29, %v3262_v37  ;;  %v948_v22 = vmax.f32 %v888_v28, 0.0  ;;  %v3296_v28 = vld [vmem:[#allocation63_spill] sm:$0xff] }
  0xde   :  { %v912_v46 = vadd.f32 %v2478_v17, %v832_v20  ;;  %v811_v34 = vadd.f32 %v751_v51, %v615_v0  ;;  %v613_v21 = vadd.f32 %v553_v7, %v417_v8  ;;  %v969_v30 = vmax.f32 %v909_v14, 0.0  ;;  %v3298_v27 = vld [vmem:[#allocation79_spill] sm:$0xff] }
  0xdf   :  { %v434_v13 = vadd.f32 %v3294_v50, %v178_v49  ;;  %v766_v32 = vmul.f32 %v2460_v2, %v1985_v47  ;;  %v164_v12 = vmul.f32 %v2358_v26, %v3286_v63  ;;  %v946_v39 = vmax.f32 %v886_v33, 0.0  ;;  %v3299_v33 = vld [vmem:[#allocation25_spill] sm:$0xff] }
  0xe0   :  { %v891_v1 = vadd.f32 %v2442_v36, %v811_v34  ;;  %v809_v23 = vadd.f32 %v749_v61, %v613_v21  ;;  %v185_v37 = vmul.f32 %v2393_v15, %v2018_v58  ;;  %1092 = vadd.xlane.f32.xlu0 %v1091_v19  ;;  %v972_v16 = vmax.f32 %v912_v46, 0.0  ;;  %v3300_v46 = vld [vmem:[#allocation80_spill] sm:$0xff] }
  0xe1   :  { %1026 = vadd.xlane.f32.xlu1 %v1025_v44  ;;  %v630_v45 = vadd.f32 %v3295_v62, %v434_v13  ;;  %v420_v57 = vadd.f32 %v3296_v28, %v164_v12  ;;  %v556_v47 = vmul.f32 %v2340_v3, %v3297_v10  ;;  %v1094_v4 = vsel %vm991_vm0, %v965_v38, 0.0  ;;  %v3306_v62 = vld [vmem:[#allocation32_spill] sm:$0xff] }
  0xe2   :  { %v1112_v51 = vsel %vm991_vm0, %v971_v59, 0.0  ;;  %v889_v14 = vadd.f32 %v2496_v40, %v809_v23  ;;  %v441_v9 = vadd.f32 %v3298_v27, %v185_v37  ;;  %v577_v19 = vmul.f32 %v2385_v31, %v3285_v41  ;;  %v3305_v37 = vld [vmem:[#allocation26_spill] sm:$0xff]  ;;  %v3309_v27 = vld [vmem:[#allocation33_spill] sm:$0xff] }
  0xe3   :  { %v826_v8 = vadd.f32 %v766_v32, %v630_v45  ;;  %v616_v5 = vadd.f32 %v556_v47, %v420_v57  ;;  %v773_v44 = vmul.f32 %v2444_v55, %v3280_v60  ;;  %v1043_v20 = vsel %vm991_vm0, %v948_v22, 0.0  ;;  %v3307_v57 = vld [vmem:[#allocation28_spill] sm:$0xff]  ;;  %v3308_v47 = vld [vmem:[#allocation55_spill] sm:$0xff] }
  0xe4   :  { %v1106_v6 = vsel %vm991_vm0, %v969_v30, 0.0  ;;  %v1037_v38 = vsel %vm991_vm0, %v946_v39, 0.0  ;;  %v182_v0 = vmul.f32 %v2417_v29, %v1988_v48  ;;  %1104 = vadd.xlane.f32.xlu0 %v2579_v42  ;;  %v2647_v7 = vsel %vm991_vm0, %v972_v16, 0.0  ;;  %v3301_v30 = vld [vmem:[#allocation23_spill] sm:$0xff]  ;;  %v3302_v48 = vld [vmem:[#allocation46_spill] sm:$0xff]  ;;  %v3304_v39 = vld [vmem:[#allocation81_spill] sm:$0xff] }
  0xe5   :  { %1041 = vadd.xlane.f32.xlu1 %v2582_v56  ;;  %v951_v61 = vmax.f32 %v891_v1, 0.0  ;;  %v637_v59 = vadd.f32 %v577_v19, %v441_v9  ;;  %v188_v49 = vmul.f32 %v2358_v26, %v3299_v33  ;;  %v949_v22 = vmax.f32 %v889_v14, 0.0  ;;  %v3303_v56 = vld [vmem:[#allocation75_spill] sm:$0xff] }
  0xe6   :  { %v438_v34 = vadd.f32 %v3300_v46, %v182_v0  ;;  %v770_v21 = vmul.f32 %v2460_v2, %v2000_v52  ;;  %v384_v50 = vmul.f32 %v3302_v48, %v3301_v30  ;;  %v906_v42 = vadd.f32 %v2474_v43, %v826_v8 }
  0xe7   :  { %v812_v13 = vadd.f32 %v3303_v56, %v616_v5  ;;  %v833_v32 = vadd.f32 %v773_v44, %v637_v59  ;;  %v187_v12 = vmul.f32 %v3287_v35, %v3299_v33  ;;  %v580_v16 = vmul.f32 %v2340_v3, %v3305_v37  ;;  %v3311_v59 = vld [vmem:[#allocation52_spill] sm:$0xff] }
  0xe8   :  { %v634_v1 = vadd.f32 %v3304_v39, %v438_v34  ;;  %v444_v23 = vadd.f32 %v384_v50, %v188_v49  ;;  %v383_v52 = vmul.f32 %v3306_v62, %v3301_v30  ;;  %1035 = vadd.xlane.f32.xlu0 %v1034_v11  ;;  %v1052_v45 = vsel %vm991_vm0, %v951_v61, 0.0  ;;  %v3310_v61 = vld [vmem:[#allocation19_spill] sm:$0xff] }
  0xe9   :  { %1095 = vadd.xlane.f32.xlu1 %v1094_v4  ;;  %v892_v28 = vadd.f32 %v2478_v17, %v812_v13  ;;  %v776_v14 = vmul.f32 %v3308_v47, %v3307_v57  ;;  %v579_v9 = vmul.f32 %v3309_v27, %v3305_v37  ;;  %v775_v44 = vmul.f32 %v2419_v24, %v3307_v57 }
  0xea   :  { %v830_v8 = vadd.f32 %v770_v21, %v634_v1  ;;  %v640_v5 = vadd.f32 %v580_v16, %v444_v23  ;;  %v443_v19 = vadd.f32 %v383_v52, %v187_v12  ;;  %v966_v0 = vmax.f32 %v906_v42, 0.0  ;;  %v3312_v1 = vld [vmem:[#allocation14_spill] sm:$0xff]  ;;  %v3313_v23 = vld [vmem:[#allocation65_spill] sm:$0xff] }
  0xeb   :  { %v913_v11 = vadd.f32 %v2496_v40, %v833_v32  ;;  %v165_v4 = vmul.f32 %v2393_v15, %v3286_v63  ;;  %v361_v49 = vmul.f32 %v3311_v59, %v3310_v61  ;;  %v1046_v46 = vsel %vm991_vm0, %v949_v22, 0.0 }
  0xec   :  { %v836_v34 = vadd.f32 %v776_v14, %v640_v5  ;;  %v639_v50 = vadd.f32 %v579_v9, %v443_v19  ;;  %v557_v21 = vmul.f32 %v2385_v31, %v3297_v10  ;;  %1044 = vadd.xlane.f32.xlu0 %v1043_v20  ;;  %v952_v56 = vmax.f32 %v892_v28, 0.0  ;;  %v3314_v28 = vld [vmem:[#allocation29_spill] sm:$0xff] }
  0xed   :  { %1113 = vadd.xlane.f32.xlu1 %v1112_v51  ;;  %v910_v42 = vadd.f32 %v2474_v43, %v830_v8  ;;  %v421_v13 = vadd.f32 %v361_v49, %v165_v4  ;;  %v162_v32 = vmul.f32 %v2417_v29, %v2003_v53  ;;  %v753_v22 = vmul.f32 %v2444_v55, %v3290_v18  ;;  %v3315_v53 = vld [vmem:[#allocation47_spill] sm:$0xff] }
  0xee   :  { %v916_v12 = vadd.f32 %v2478_v17, %v836_v34  ;;  %v835_v39 = vadd.f32 %v775_v44, %v639_v50  ;;  %v358_v16 = vmul.f32 %v3313_v23, %v3312_v1  ;;  %v1097_v52 = vsel %vm991_vm0, %v966_v0, 0.0 }
  0xef   :  { %v973_v20 = vmax.f32 %v913_v11, 0.0  ;;  %v617_v51 = vadd.f32 %v557_v21, %v421_v13  ;;  %v168_v14 = vmul.f32 %v2358_v26, %v3314_v28  ;;  %v554_v5 = vmul.f32 %v3315_v53, %v3278_v25  ;;  %v3316_v11 = vld [vmem:[#allocation27_spill] sm:$0xff]  ;;  %v3317_v13 = vld [vmem:[#allocation30_spill] sm:$0xff] }
  0xf0   :  { %v915_v9 = vadd.f32 %v2442_v36, %v835_v39  ;;  %v418_v8 = vadd.f32 %v358_v16, %v162_v32  ;;  %v750_v19 = vmul.f32 %v2460_v2, %v3272_v54  ;;  %1107 = vadd.xlane.f32.xlu0 %v1106_v6  ;;  %v1055_v44 = vsel %vm991_vm0, %v952_v56, 0.0  ;;  %v3318_v25 = vld [vmem:[#allocation34_spill] sm:$0xff] }
  0xf1   :  { %1038 = vadd.xlane.f32.xlu1 %v1037_v38  ;;  %v970_v4 = vmax.f32 %v910_v42, 0.0  ;;  %v976_v0 = vmax.f32 %v916_v12, 0.0  ;;  %v364_v49 = vmul.f32 %v3302_v48, %v3316_v11  ;;  %v813_v50 = vadd.f32 %v753_v22, %v617_v51 }
  0xf2   :  { %v975_v34 = vmax.f32 %v915_v9, 0.0  ;;  %v614_v21 = vadd.f32 %v554_v5, %v418_v8  ;;  %v560_v32 = vmul.f32 %v2340_v3, %v3317_v13  ;;  %v756_v1 = vmul.f32 %v3308_v47, %v3318_v25 }
  0xf3   :  { %v424_v39 = vadd.f32 %v364_v49, %v168_v14  ;;  %v167_v54 = vmul.f32 %v3287_v35, %v3314_v28  ;;  %v363_v6 = vmul.f32 %v3306_v62, %v3316_v11  ;;  %v893_v38 = vadd.f32 %v2496_v40, %v813_v50 }
  0xf4   :  { %v810_v56 = vadd.f32 %v750_v19, %v614_v21  ;;  %v559_v42 = vmul.f32 %v3309_v27, %v3317_v13  ;;  %v755_v12 = vmul.f32 %v2419_v24, %v3318_v25  ;;  %1116 = vadd.xlane.f32.xlu0 %v2647_v7  ;;  %v1118_v22 = vsel %vm991_vm0, %v973_v20, 0.0 }
  0xf5   :  { %1053 = vadd.xlane.f32.xlu1 %v1052_v45  ;;  %v620_v16 = vadd.f32 %v560_v32, %v424_v39  ;;  %v423_v51 = vadd.f32 %v363_v6, %v167_v54  ;;  %v189_v14 = vmul.f32 %v2393_v15, %v3299_v33  ;;  %v1109_v9 = vsel %vm991_vm0, %v970_v4, 0.0 }
  0xf6   :  { %v1127_v8 = vsel %vm991_vm0, %v976_v0, 0.0  ;;  %v2720_v5 = vsel %vm991_vm0, %v975_v34, 0.0  ;;  %v385_v19 = vmul.f32 %v3311_v59, %v3301_v30  ;;  %v890_v7 = vadd.f32 %v2474_v43, %v810_v56  ;;  %v3319_v0 = vld [vmem:[#allocation16_spill] sm:$0xff] }
  0xf7   :  { %v816_v45 = vadd.f32 %v756_v1, %v620_v16  ;;  %v619_v49 = vadd.f32 %v559_v42, %v423_v51  ;;  %v186_v20 = vmul.f32 %v2417_v29, %v2018_v58  ;;  %v581_v21 = vmul.f32 %v2385_v31, %v3305_v37  ;;  %v3320_v42 = vld [vmem:[#allocation35_spill] sm:$0xff] }
  0xf8   :  { %v445_v50 = vadd.f32 %v385_v19, %v189_v14  ;;  %v777_v4 = vmul.f32 %v2444_v55, %v3307_v57  ;;  %v382_v34 = vmul.f32 %v3313_v23, %v3319_v0  ;;  %1047 = vadd.xlane.f32.xlu0 %v1046_v46  ;;  %v953_v32 = vmax.f32 %v893_v38, 0.0 }
  0xf9   :  { %1098 = vadd.xlane.f32.xlu1 %v1097_v52  ;;  %v896_v39 = vadd.f32 %v2478_v17, %v816_v45  ;;  %v815_v1 = vadd.f32 %v755_v12, %v619_v49  ;;  %v578_v54 = vmul.f32 %v3315_v53, %v3285_v41  ;;  %v774_v56 = vmul.f32 %v2460_v2, %v3280_v60  ;;  %v3321_v52 = vld [vmem:[#allocation31_spill] sm:$0xff]  ;;  %v3322_v45 = vld [vmem:[#allocation36_spill] sm:$0xff] }
  0xfa   :  { %v641_v58 = vadd.f32 %v581_v21, %v445_v50  ;;  %v442_v6 = vadd.f32 %v382_v34, %v186_v20  ;;  %v192_v16 = vmul.f32 %v2358_v26, %v3320_v42  ;;  %v950_v51 = vmax.f32 %v890_v7, 0.0  ;;  %v3323_v7 = vld [vmem:[#allocation38_spill] sm:$0xff] }
  0xfb   :  { %v956_v14 = vmax.f32 %v896_v39, 0.0  ;;  %v895_v46 = vadd.f32 %v2442_v36, %v815_v1  ;;  %v388_v38 = vmul.f32 %v3302_v48, %v3321_v52  ;;  %v584_v41 = vmul.f32 %v2340_v3, %v3322_v45 }
  0xfc   :  { %v837_v19 = vadd.f32 %v777_v4, %v641_v58  ;;  %v638_v12 = vadd.f32 %v578_v54, %v442_v6  ;;  %v191_v49 = vmul.f32 %v3287_v35, %v3320_v42  ;;  %1056 = vadd.xlane.f32.xlu0 %v1055_v44  ;;  %v1058_v60 = vsel %vm991_vm0, %v953_v32, 0.0 }
  0xfd   :  { %1119 = vadd.xlane.f32.xlu1 %v1118_v22  ;;  %v448_v20 = vadd.f32 %v388_v38, %v192_v16  ;;  %v780_v50 = vmul.f32 %v3308_v47, %v3323_v7  ;;  %v387_v21 = vmul.f32 %v3306_v62, %v3321_v52  ;;  %v955_v0 = vmax.f32 %v895_v46, 0.0 }
  0xfe   :  { %v917_v4 = vadd.f32 %v2496_v40, %v837_v19  ;;  %v834_v34 = vadd.f32 %v774_v56, %v638_v12  ;;  %v583_v39 = vmul.f32 %v3309_v27, %v3322_v45  ;;  %v779_v44 = vmul.f32 %v2419_v24, %v3323_v7 }
  0xff   :  { %v644_v1 = vadd.f32 %v584_v41, %v448_v20  ;;  %v447_v54 = vadd.f32 %v387_v21, %v191_v49  ;;  %v169_v22 = vmul.f32 %v2393_v15, %v3314_v28  ;;  %v1049_v32 = vsel %vm991_vm0, %v950_v51, 0.0 }
 0x100   :  { %v1067_v58 = vsel %vm991_vm0, %v956_v14, 0.0  ;;  %v914_v6 = vadd.f32 %v2474_v43, %v834_v34  ;;  %v365_v56 = vmul.f32 %v3311_v59, %v3316_v11  ;;  %1110 = vadd.xlane.f32.xlu0 %v1109_v9  ;;  %v977_v16 = vmax.f32 %v917_v4, 0.0  ;;  %v3324_v34 = vld [vmem:[#allocation39_spill] sm:$0xff] }
 0x101   :  { %1128 = vadd.xlane.f32.xlu1 %v1127_v8  ;;  %v840_v46 = vadd.f32 %v780_v50, %v644_v1  ;;  %v643_v38 = vadd.f32 %v583_v39, %v447_v54  ;;  %v561_v19 = vmul.f32 %v2385_v31, %v3317_v13  ;;  %v757_v51 = vmul.f32 %v2444_v55, %v3318_v25  ;;  %v3325_v54 = vld [vmem:[#allocation37_spill] sm:$0xff] }
 0x102   :  { %v974_v12 = vmax.f32 %v914_v6, 0.0  ;;  %v425_v41 = vadd.f32 %v365_v56, %v169_v22  ;;  %v166_v14 = vmul.f32 %v2417_v29, %v3286_v63  ;;  %v1064_v49 = vsel %vm991_vm0, %v955_v0, 0.0 }
 0x103   :  { %v920_v20 = vadd.f32 %v2478_v17, %v840_v46  ;;  %v839_v9 = vadd.f32 %v779_v44, %v643_v38  ;;  %v362_v8 = vmul.f32 %v3313_v23, %v3310_v61  ;;  %v558_v21 = vmul.f32 %v3315_v53, %v3297_v10  ;;  %v3326_v46 = vld [vmem:[#allocation40_spill] sm:$0xff] }
 0x104   :  { %v621_v50 = vadd.f32 %v561_v19, %v425_v41  ;;  %v754_v4 = vmul.f32 %v2460_v2, %v3290_v18  ;;  %v172_v39 = vmul.f32 %v2358_v26, %v3324_v34  ;;  %1125 = vadd.xlane.f32.xlu0 %v2720_v5  ;;  %v368_v61 = vmul.f32 %v3302_v48, %v3325_v54 }
 0x105   :  { %1059 = vadd.xlane.f32.xlu1 %v1058_v60  ;;  %v980_v63 = vmax.f32 %v920_v20, 0.0  ;;  %v919_v0 = vadd.f32 %v2442_v36, %v839_v9  ;;  %v422_v1 = vadd.f32 %v362_v8, %v166_v14  ;;  %v1130_v44 = vsel %vm991_vm0, %v977_v16, 0.0  ;;  %v3327_v60 = vld [vmem:[#allocation42_spill] sm:$0xff] }
 0x106   :  { %v1121_v10 = vsel %vm991_vm0, %v974_v12, 0.0  ;;  %v817_v22 = vadd.f32 %v757_v51, %v621_v50  ;;  %v171_v18 = vmul.f32 %v3287_v35, %v3324_v34  ;;  %v428_v56 = vadd.f32 %v368_v61, %v172_v39 }
 0x107   :  { %v618_v6 = vadd.f32 %v558_v21, %v422_v1  ;;  %v564_v5 = vmul.f32 %v2340_v3, %v3326_v46  ;;  %v760_v38 = vmul.f32 %v3308_v47, %v3327_v60  ;;  %v1139_v19 = vsel %vm991_vm0, %v980_v63, 0.0 }
 0x108   :  { %v897_v41 = vadd.f32 %v2496_v40, %v817_v22  ;;  %v367_v16 = vmul.f32 %v3306_v62, %v3325_v54  ;;  %v563_v12 = vmul.f32 %v3309_v27, %v3326_v46  ;;  %1050 = vadd.xlane.f32.xlu0 %v1049_v32  ;;  %v979_v51 = vmax.f32 %v919_v0, 0.0 }
 0x109   :  { %1068 = vadd.xlane.f32.xlu1 %v1067_v58  ;;  %v814_v14 = vadd.f32 %v754_v4, %v618_v6  ;;  %v624_v20 = vadd.f32 %v564_v5, %v428_v56  ;;  %v193_v9 = vmul.f32 %v2393_v15, %v3320_v42  ;;  %v759_v21 = vmul.f32 %v2419_v24, %v3327_v60 }
 0x10a   :  { %v957_v8 = vmax.f32 %v897_v41, 0.0  ;;  %v427_v50 = vadd.f32 %v367_v16, %v171_v18  ;;  %v389_v39 = vmul.f32 %v3311_v59, %v3321_v52  ;;  %v585_v32 = vmul.f32 %v2385_v31, %v3322_v45  ;;  %v3328_v16 = vld [vmem:[#allocation43_spill] sm:$0xff] }
 0x10b   :  { %v894_v63 = vadd.f32 %v2474_v43, %v814_v14  ;;  %v820_v1 = vadd.f32 %v760_v38, %v624_v20  ;;  %v190_v58 = vmul.f32 %v2417_v29, %v3299_v33  ;;  %v781_v61 = vmul.f32 %v2444_v55, %v3323_v7  ;;  %v3330_v14 = vld [vmem:[#allocation44_spill] sm:$0xff] }
 0x10c   :  { %v623_v4 = vadd.f32 %v563_v12, %v427_v50  ;;  %v449_v0 = vadd.f32 %v389_v39, %v193_v9  ;;  %v386_v22 = vmul.f32 %v3313_v23, %v3301_v30  ;;  %1065 = vadd.xlane.f32.xlu0 %v1064_v49  ;;  %v1136_v18 = vsel %vm991_vm0, %v979_v51, 0.0 }
 0x10d   :  { %1131 = vadd.xlane.f32.xlu1 %v1130_v44  ;;  %v900_v6 = vadd.f32 %v2478_v17, %v820_v1  ;;  %v582_v56 = vmul.f32 %v3315_v53, %v3305_v37  ;;  %v778_v33 = vmul.f32 %v2460_v2, %v3307_v57  ;;  %v196_v12 = vmul.f32 %v2358_v26, %v3328_v16  ;;  %v3329_v44 = vld [vmem:[#allocation41_spill] sm:$0xff]  ;;  %v1755_v57 = vld [vmem:[%s3118_s0 + $0x34] sm:$0xf] }
 0x10e   :  { %v819_v5 = vadd.f32 %v759_v21, %v623_v4  ;;  %v645_v38 = vadd.f32 %v585_v32, %v449_v0  ;;  %v446_v41 = vadd.f32 %v386_v22, %v190_v58  ;;  %v1070_v30 = vsel %vm991_vm0, %v957_v8, 0.0  ;;  %v3331_v21 = vld [vmem:[#allocation11_spill] sm:$0xff] }
 0x10f   :  { %v954_v49 = vmax.f32 %v894_v63, 0.0  ;;  %v392_v51 = vmul.f32 %v3302_v48, %v3329_v44  ;;  %v588_v20 = vmul.f32 %v2340_v3, %v3330_v14  ;;  %v2831_v39 = vrot.slane %v1755_v57, %v3331_v21 }
 0x110   :  { %v899_v37 = vadd.f32 %v2442_v36, %v819_v5  ;;  %v841_v9 = vadd.f32 %v781_v61, %v645_v38  ;;  %v642_v50 = vadd.f32 %v582_v56, %v446_v41  ;;  %1122 = vadd.xlane.f32.xlu0 %v1121_v10  ;;  %v960_v8 = vmax.f32 %v900_v6, 0.0 }
 0x111   :  { %1140 = vadd.xlane.f32.xlu1 %v1139_v19  ;;  %v452_v63 = vadd.f32 %v392_v51, %v196_v12  ;;  %v195_v1 = vmul.f32 %v3287_v35, %v3328_v16  ;;  %v391_v32 = vmul.f32 %v3306_v62, %v3329_v44  ;;  %v784_v61 = vmul.f32 %v3308_v47, %v2831_v39 }
 0x112   :  { %v959_v58 = vmax.f32 %v899_v37, 0.0  ;;  %v921_v4 = vadd.f32 %v2496_v40, %v841_v9  ;;  %v838_v0 = vadd.f32 %v778_v33, %v642_v50  ;;  %v587_v10 = vmul.f32 %v3309_v27, %v3330_v14 }
 0x113   :  { %v648_v22 = vadd.f32 %v588_v20, %v452_v63  ;;  %v451_v56 = vadd.f32 %v391_v32, %v195_v1  ;;  %v783_v19 = vmul.f32 %v2419_v24, %v2831_v39  ;;  %v1061_v6 = vsel %vm991_vm0, %v954_v49, 0.0 }
 0x114   :  { %v981_v5 = vmax.f32 %v921_v4, 0.0  ;;  %v918_v38 = vadd.f32 %v2474_v43, %v838_v0  ;;  %v173_v41 = vmul.f32 %v2393_v15, %v3324_v34  ;;  %1137 = vadd.xlane.f32.xlu0 %v1136_v18  ;;  %v1079_v33 = vsel %vm991_vm0, %v960_v8, 0.0 }
 0x115   :  { %1071 = vadd.xlane.f32.xlu1 %v1070_v30  ;;  %v844_v12 = vadd.f32 %v784_v61, %v648_v22  ;;  %v647_v51 = vadd.f32 %v587_v10, %v451_v56  ;;  %v369_v20 = vmul.f32 %v3311_v59, %v3325_v54  ;;  %v1076_v37 = vsel %vm991_vm0, %v959_v58, 0.0 }
 0x116   :  { %v978_v9 = vmax.f32 %v918_v38, 0.0  ;;  %v565_v49 = vmul.f32 %v2385_v31, %v3326_v46  ;;  %v761_v50 = vmul.f32 %v2444_v55, %v3327_v60  ;;  %v170_v8 = vmul.f32 %v2417_v29, %v3314_v28 }
 0x117   :  { %v924_v57 = vadd.f32 %v2478_v17, %v844_v12  ;;  %v843_v18 = vadd.f32 %v783_v19, %v647_v51  ;;  %v429_v30 = vadd.f32 %v369_v20, %v173_v41  ;;  %v1142_v63 = vsel %vm991_vm0, %v981_v5, 0.0 }
 0x118   :  { %v1133_v1 = vsel %vm991_vm0, %v978_v9, 0.0  ;;  %v366_v32 = vmul.f32 %v3313_v23, %v3316_v11  ;;  %v562_v58 = vmul.f32 %v3315_v53, %v3317_v13  ;;  %1062 = vadd.xlane.f32.xlu0 %v1061_v6  ;;  %v197_v22 = vmul.f32 %v2393_v15, %v3328_v16  ;;  %v3332_v9 = vld [vmem:[#allocation10_spill] sm:$0xff] }
 0x119   :  { %1080 = vadd.xlane.f32.xlu1 %v1079_v33  ;;  %v984_v4 = vmax.f32 %v924_v57, 0.0  ;;  %v923_v0 = vadd.f32 %v2442_v36, %v843_v18  ;;  %v625_v61 = vadd.f32 %v565_v49, %v429_v30  ;;  %v758_v56 = vmul.f32 %v2460_v2, %v3318_v25  ;;  %v3333_v18 = vld [vmem:[#allocation45_spill] sm:$0xff] }
 0x11a   :  { %v426_v28 = vadd.f32 %v366_v32, %v170_v8  ;;  %v393_v10 = vmul.f32 %v3311_v59, %v3329_v44  ;;  %v589_v11 = vmul.f32 %v2385_v31, %v3330_v14  ;;  %v785_v6 = vmul.f32 %v2444_v55, %v2831_v39  ;;  %v3334_v8 = vld [vmem:[#allocation9_spill] sm:$0xff] }
 0x11b   :  { %v1151_v13 = vsel %vm991_vm0, %v984_v4, 0.0  ;;  %v821_v19 = vadd.f32 %v761_v50, %v625_v61  ;;  %v194_v5 = vmul.f32 %v2417_v29, %v3320_v42  ;;  %v390_v25 = vmul.f32 %v3313_v23, %v3321_v52  ;;  %v1756_v42 = vld [vmem:[%s3118_s0 + $0x38] sm:$0xf] }
 0x11c   :  { %v622_v38 = vadd.f32 %v562_v58, %v426_v28  ;;  %v453_v41 = vadd.f32 %v393_v10, %v197_v22  ;;  %v586_v33 = vmul.f32 %v3315_v53, %v3322_v45  ;;  %1077 = vadd.xlane.f32.xlu0 %v1076_v37  ;;  %v983_v12 = vmax.f32 %v923_v0, 0.0 }
 0x11d   :  { %1143 = vadd.xlane.f32.xlu1 %v1142_v63  ;;  %v901_v51 = vadd.f32 %v2496_v40, %v821_v19  ;;  %v782_v20 = vmul.f32 %v2460_v2, %v3323_v7  ;;  %v122_v49 = vrot.slane %v1756_v42, %v3332_v9  ;;  %v450_v52 = vadd.f32 %v390_v25, %v194_v5 }
 0x11e   :  { %v818_v50 = vadd.f32 %v758_v56, %v622_v38  ;;  %v649_v57 = vadd.f32 %v589_v11, %v453_v41  ;;  %v396_v45 = vmul.f32 %v3302_v48, %v3333_v18  ;;  %v2894_v63 = vrot.slane %v1756_v42, %v3334_v8 }
 0x11f   :  { %v961_v37 = vmax.f32 %v901_v51, 0.0  ;;  %v200_v30 = vmul.f32 %v2358_v26, %v122_v49  ;;  %v2897_v7 = vrot.slane %v1756_v42, %v3331_v21  ;;  %v646_v4 = vadd.f32 %v586_v33, %v450_v52 }
 0x120   :  { %v898_v32 = vadd.f32 %v2474_v43, %v818_v50  ;;  %v845_v58 = vadd.f32 %v785_v6, %v649_v57  ;;  %v199_v0 = vmul.f32 %v3287_v35, %v122_v49  ;;  %1134 = vadd.xlane.f32.xlu0 %v1133_v1  ;;  %v1148_v61 = vsel %vm991_vm0, %v983_v12, 0.0 }
 0x121   :  { %1152 = vadd.xlane.f32.xlu1 %v1151_v13  ;;  %v1082_v48 = vsel %vm991_vm0, %v961_v37, 0.0  ;;  %v456_v22 = vadd.f32 %v396_v45, %v200_v30  ;;  %v592_v26 = vmul.f32 %v2340_v3, %v2894_v63  ;;  %v842_v56 = vadd.f32 %v782_v20, %v646_v4 }
 0x122   :  { %v958_v28 = vmax.f32 %v898_v32, 0.0  ;;  %v925_v21 = vadd.f32 %v2496_v40, %v845_v58  ;;  %v395_v10 = vmul.f32 %v3306_v62, %v3333_v18  ;;  %v788_v35 = vmul.f32 %v3308_v47, %v2897_v7 }
 0x123   :  { %v652_v11 = vadd.f32 %v592_v26, %v456_v22  ;;  %v591_v1 = vmul.f32 %v3309_v27, %v2894_v63  ;;  %v198_v13 = vmul.f32 %v2417_v29, %v3328_v16  ;;  %v922_v3 = vadd.f32 %v2474_v43, %v842_v56  ;;  %v58_v56 = vld [vmem:[#allocation2] sm:$0xff] }
 0x124   :  { %v985_v19 = vmax.f32 %v925_v21, 0.0  ;;  %v455_v6 = vadd.f32 %v395_v10, %v199_v0  ;;  %v787_v5 = vmul.f32 %v2419_v24, %v2897_v7  ;;  %1149 = vadd.xlane.f32.xlu0 %v1148_v61  ;;  %v1073_v62 = vsel %vm991_vm0, %v958_v28, 0.0  ;;  %v59_v10 = vld [vmem:[#allocation2 + $0x8] sm:$0xff] }
 0x125   :  { %1083 = vadd.xlane.f32.xlu1 %v1082_v48  ;;  %v848_v38 = vadd.f32 %v788_v35, %v652_v11  ;;  %v394_v47 = vmul.f32 %v3313_v23, %v3329_v44  ;;  %v982_v41 = vmax.f32 %v922_v3, 0.0  ;;  %v590_v16 = vmul.f32 %v3315_v53, %v3330_v14 }
 0x126   :  { %v651_v27 = vadd.f32 %v591_v1, %v455_v6  ;;  %v786_v25 = vmul.f32 %v2460_v2, %v2831_v39  ;;  %v174_v24 = vmul.f32 %v2417_v29, %v3324_v34  ;;  %v370_v51 = vmul.f32 %v3313_v23, %v3325_v54  ;;  %v60_v1 = vld [vmem:[#allocation2 + $0x10] sm:$0xff] }
 0x127   :  { %v928_v33 = vadd.f32 %v2478_v17, %v848_v38  ;;  %v454_v12 = vadd.f32 %v394_v47, %v198_v13  ;;  %v1154_v20 = vsel %vm991_vm0, %v985_v19, 0.0  ;;  %v566_v42 = vmul.f32 %v3315_v53, %v3326_v46  ;;  %v61_v13 = vld [vmem:[#allocation2 + $0x18] sm:$0xff]  ;;  %v3336_v6 = vld [vmem:[#allocation8_spill] sm:$0xff] }
 0x128   :  { %v847_v44 = vadd.f32 %v787_v5, %v651_v27  ;;  %v762_v14 = vmul.f32 %v2460_v2, %v3327_v60  ;;  %1074 = vadd.xlane.f32.xlu0 %v1073_v62  ;;  %v430_v9 = vadd.f32 %v370_v51, %v174_v24  ;;  %v202_v50 = vmul.f32 %v2417_v29, %v122_v49 }
 0x129   :  { %1155 = vadd.xlane.f32.xlu1 %v1154_v20  ;;  %v988_v39 = vmax.f32 %v928_v33, 0.0  ;;  %v650_v17 = vadd.f32 %v590_v16, %v454_v12  ;;  %v1145_v34 = vsel %vm991_vm0, %v982_v41, 0.0  ;;  %v398_v57 = vmul.f32 %v3313_v23, %v3333_v18 }
 0x12a   :  { %v927_v54 = vadd.f32 %v2442_v36, %v847_v44  ;;  %v594_v46 = vmul.f32 %v3315_v53, %v2894_v63  ;;  %v626_v45 = vadd.f32 %v566_v42, %v430_v9  ;;  %v790_v60 = vmul.f32 %v2460_v2, %v2897_v7 }
 0x12b   :  { %v846_v52 = vadd.f32 %v786_v25, %v650_v17  ;;  %v201_v37 = vmul.f32 %v2393_v15, %v122_v49  ;;  %v1163_v30 = vsel %vm991_vm0, %v988_v39, 0.0  ;;  %v458_v8 = vadd.f32 %v398_v57, %v202_v50 }
 0x12c   :  { %v987_v29 = vmax.f32 %v927_v54, 0.0  ;;  %v397_v36 = vmul.f32 %v3311_v59, %v3333_v18  ;;  %1146 = vadd.xlane.f32.xlu0 %v1145_v34  ;;  %v822_v32 = vadd.f32 %v762_v14, %v626_v45  ;;  %v593_v4 = vmul.f32 %v2385_v31, %v2894_v63 }
 0x12d   :  { %1164 = vadd.xlane.f32.xlu1 %v1163_v30  ;;  %v926_v23 = vadd.f32 %v2474_v43, %v846_v52  ;;  %v654_v53 = vadd.f32 %v594_v46, %v458_v8  ;;  %v789_v15 = vmul.f32 %v2444_v55, %v2897_v7  ;;  %v1732_v11 = vpack.c.bf16 %v59_v10, %v58_v56 }
 0x12e   :  { %v457_v58 = vadd.f32 %v397_v36, %v201_v37  ;;  %v902_v49 = vadd.f32 %v2474_v43, %v822_v32  ;;  %v1160_v0 = vsel %vm991_vm0, %v987_v29, 0.0  ;;  %v3335_v35 = vlaneseq }
 0x12f   :  { %v986_v2 = vmax.f32 %v926_v23, 0.0  ;;  %v850_v61 = vadd.f32 %v790_v60, %v654_v53  ;;  %1733 = vmatprep.subr.bf16.mxu0 %v1732_v11  ;;  %v1736_v19 = vpack.c.bf16 %v61_v13, %v60_v1 }
 0x130   :  { %v653_v59 = vadd.f32 %v593_v4, %v457_v58  ;;  %1161 = vadd.xlane.f32.xlu0 %v1160_v0  ;;  %v962_v48 = vmax.f32 %v902_v49, 0.0  ;;  %1735 = vmatpush3.bf16.msra.mxu0 %v1732_v11 }
 0x131   :  { %v1157_v18 = vsel %vm991_vm0, %v986_v2, 0.0  ;;  %v930_v22 = vadd.f32 %v2474_v43, %v850_v61  ;;  %v1300_v43 = vand.u32 127, %v3335_v35  ;;  %1737 = vmatprep.subr.bf16.mxu0 %v1736_v19 }
 0x132   :  { %1158 = vadd.xlane.f32.xlu1 %v1157_v18  ;;  %v849_v26 = vadd.f32 %v789_v15, %v653_v59  ;;  %v1085_v31 = vsel %vm991_vm0, %v962_v48, 0.0 }
 0x133   :  { %v990_v63 = vmax.f32 %v930_v22, 0.0  ;;  %v1305_v3 = vadd.s32 4294967288, %v1300_v43  ;;  %v2962_v5 = vsub.s32 %v1300_v43, %v3336_v6  ;;  %v1312_v47 = vadd.s32 4294967280, %v1300_v43 }
 0x134   :  { %v929_v55 = vadd.f32 %v2496_v40, %v849_v26  ;;  %1086 = vadd.xlane.f32.xlu0 %v1085_v31  ;;  %1739 = vmatpush3.bf16.msra.mxu0 %v1736_v19  ;;  %v1319_v50 = vadd.s32 4294967272, %v1300_v43 }
 0x135   :  { %v1169_v7 = vsel %vm991_vm0, %v990_v63, 0.0  ;;  %v2965_v38 = vsub.s32 %v1305_v3, %v3336_v6  ;;  %v2970_v24 = vsub.s32 %v1312_v47, %v3336_v6 }
 0x136   :  { %v989_v28 = vmax.f32 %v929_v55, 0.0  ;;  %1170 = vadd.xlane.f32.xlu1 %v1169_v7  ;;  %v2980_v37 = vsub.s32 %v1319_v50, %v3336_v6 }
 0x138   :  { %v1166_v21 = vsel %vm991_vm0, %v989_v28, 0.0 }
 0x139   :  { %1167 = vadd.xlane.f32.xlu0 %v1166_v21 }
 0x148   :  { %v994_v40 = vpop.xlane.xlu1 %993 }
 0x149   :  { %v1173_v62 = vmul.f32 0.0625, %v994_v40 }
 0x14b   :  { %v1304_v25 = vrot.slane %v1173_v62, %v2962_v5 }
 0x151   :  { %v997_v41 = vpop.xlane.xlu0 %996 }
 0x152   :  { %v1009_v27 = vpop.xlane.xlu1 %1008  ;;  %v1174_v16 = vmul.f32 0.0625, %v997_v41 }
 0x153   :  { %v1178_v12 = vmul.f32 0.0625, %v1009_v27 }
 0x154   :  { %v1309_v33 = vrot.slane %v1174_v16, %v2965_v38 }
 0x155   :  { %v1006_v51 = vpop.xlane.xlu0 %1005  ;;  %v1333_v39 = vrot.slane %v1178_v12, %v2965_v38 }
 0x156   :  { %v1012_v20 = vpop.xlane.xlu1 %1011  ;;  %v1311_v44 = vsel %vm1310_vm1, %v1309_v33, %v1304_v25  ;;  %v1177_v42 = vmul.f32 0.0625, %v1006_v51 }
 0x157   :  { %v1179_v14 = vmul.f32 0.0625, %v1012_v20 }
 0x158   :  { %v1329_v17 = vrot.slane %v1177_v42, %v2962_v5 }
 0x159   :  { %v1338_v9 = vrot.slane %v1179_v14, %v2970_v24  ;;  %v1000_v34 = vpop.xlane.xlu0 %999 }
 0x15a   :  { %v1021_v54 = vpop.xlane.xlu1 %1020  ;;  %v1334_v57 = vsel %vm1310_vm1, %v1333_v39, %v1329_v17  ;;  %v1175_v46 = vmul.f32 0.0625, %v1000_v34 }
 0x15b   :  { %v1339_v52 = vsel %vm1317_vm2, %v1338_v9, %v1334_v57  ;;  %v1182_v60 = vmul.f32 0.0625, %v1021_v54 }
 0x15c   :  { %v1316_v45 = vrot.slane %v1175_v46, %v2970_v24 }
 0x15d   :  { %v1018_v30 = vpop.xlane.xlu0 %1017  ;;  %v1352_v32 = vrot.slane %v1182_v60, %v2965_v38 }
 0x15e   :  { %v1015_v29 = vpop.xlane.xlu1 %1014  ;;  %v1318_v8 = vsel %vm1317_vm2, %v1316_v45, %v1311_v44  ;;  %v1181_v36 = vmul.f32 0.0625, %v1018_v30 }
 0x15f   :  { %v1180_v23 = vmul.f32 0.0625, %v1015_v29 }
 0x160   :  { %v1348_v53 = vrot.slane %v1181_v36, %v2962_v5 }
 0x161   :  { %v1343_v58 = vrot.slane %v1180_v23, %v2980_v37  ;;  %v1003_v4 = vpop.xlane.xlu0 %1002 }
 0x162   :  { %v1030_v15 = vpop.xlane.xlu1 %1029  ;;  %v1353_v2 = vsel %vm1310_vm1, %v1352_v32, %v1348_v53  ;;  %v1176_v0 = vmul.f32 0.0625, %v1003_v4 }
 0x163   :  { %v1344_v49 = vsel %vm1324_vm3, %v1343_v58, %v1339_v52  ;;  %v1185_v31 = vmul.f32 0.0625, %v1030_v15 }
 0x164   :  { %v1323_v61 = vrot.slane %v1176_v0, %v2980_v37 }
 0x165   :  { %v1024_v59 = vpop.xlane.xlu0 %1023  ;;  %v1367_v56 = vrot.slane %v1185_v31, %v2962_v5 }
 0x166   :  { %v1090_v18 = vpop.xlane.xlu1 %1089  ;;  %v1325_v48 = vsel %vm1324_vm3, %v1323_v61, %v1318_v8  ;;  %v1183_v22 = vmul.f32 0.0625, %v1024_v59 }
 0x167   :  { %v1593_v26 = vsel %vm1592_vm4, %v1344_v49, %v1325_v48  ;;  %v1205_v10 = vmul.f32 0.0625, %v1090_v18 }
 0x168   :  { %v1357_v63 = vrot.slane %v1183_v22, %v2970_v24 }
 0x169   :  { %v1033_v55 = vpop.xlane.xlu0 %1032  ;;  %v1462_v3 = vrot.slane %v1205_v10, %v2962_v5 }
 0x16a   :  { %v1102_v7 = vpop.xlane.xlu1 %1101  ;;  %v1358_v28 = vsel %vm1317_vm2, %v1357_v63, %v1353_v2  ;;  %v1186_v21 = vmul.f32 0.0625, %v1033_v55 }
 0x16b   :  { %v1209_v40 = vmul.f32 0.0625, %v1102_v7 }
 0x16c   :  { %v1371_v11 = vrot.slane %v1186_v21, %v2965_v38 }
 0x16d   :  { %v1093_v35 = vpop.xlane.xlu0 %1092  ;;  %v1481_v12 = vrot.slane %v1209_v40, %v2962_v5 }
 0x16e   :  { %v1027_v43 = vpop.xlane.xlu1 %1026  ;;  %v1372_v1 = vsel %vm1310_vm1, %v1371_v11, %v1367_v56  ;;  %v1206_v13 = vmul.f32 0.0625, %v1093_v35 }
 0x16f   :  { %v1184_v19 = vmul.f32 0.0625, %v1027_v43 }
 0x170   :  { %v1466_v6 = vrot.slane %v1206_v13, %v2965_v38 }
 0x171   :  { %v1362_v62 = vrot.slane %v1184_v19, %v2980_v37  ;;  %v1105_v47 = vpop.xlane.xlu0 %1104 }
 0x172   :  { %v1042_v41 = vpop.xlane.xlu1 %1041  ;;  %v1467_v27 = vsel %vm1310_vm1, %v1466_v6, %v1462_v3  ;;  %v1210_v25 = vmul.f32 0.0625, %v1105_v47 }
 0x173   :  { %v1363_v16 = vsel %vm1324_vm3, %v1362_v62, %v1358_v28  ;;  %v1189_v17 = vmul.f32 0.0625, %v1042_v41 }
 0x174   :  { %v1595_v33 = vsel %vm1594_vm5, %v1363_v16, %v1593_v26  ;;  %v1485_v51 = vrot.slane %v1210_v25, %v2965_v38 }
 0x175   :  { %v1036_v20 = vpop.xlane.xlu0 %1035  ;;  %v1386_v45 = vrot.slane %v1189_v17, %v2962_v5 }
 0x176   :  { %v1096_v44 = vpop.xlane.xlu1 %1095  ;;  %v1486_v42 = vsel %vm1310_vm1, %v1485_v51, %v1481_v12  ;;  %v1187_v14 = vmul.f32 0.0625, %v1036_v20 }
 0x177   :  { %v1207_v39 = vmul.f32 0.0625, %v1096_v44 }
 0x178   :  { %v1376_v9 = vrot.slane %v1187_v14, %v2970_v24 }
 0x179   :  { %v1471_v50 = vrot.slane %v1207_v39, %v2970_v24  ;;  %v1045_v34 = vpop.xlane.xlu0 %1044 }
 0x17a   :  { %v1114_v54 = vpop.xlane.xlu1 %1113  ;;  %v1377_v57 = vsel %vm1317_vm2, %v1376_v9, %v1372_v1  ;;  %v1190_v52 = vmul.f32 0.0625, %v1045_v34 }
 0x17b   :  { %v1472_v46 = vsel %vm1317_vm2, %v1471_v50, %v1467_v27  ;;  %v1213_v41 = vmul.f32 0.0625, %v1114_v54 }
 0x17c   :  { %v1390_v60 = vrot.slane %v1190_v52, %v2965_v38 }
 0x17d   :  { %v1108_v30 = vpop.xlane.xlu0 %1107  ;;  %v1500_v20 = vrot.slane %v1213_v41, %v2962_v5 }
 0x17e   :  { %v1039_v29 = vpop.xlane.xlu1 %1038  ;;  %v1391_v8 = vsel %vm1310_vm1, %v1390_v60, %v1386_v45  ;;  %v1211_v36 = vmul.f32 0.0625, %v1108_v30 }
 0x17f   :  { %v1188_v23 = vmul.f32 0.0625, %v1039_v29 }
 0x180   :  { %v1490_v32 = vrot.slane %v1211_v36, %v2970_v24 }
 0x181   :  { %v1381_v53 = vrot.slane %v1188_v23, %v2980_v37  ;;  %v1117_v58 = vpop.xlane.xlu0 %1116 }
 0x182   :  { %v1054_v4 = vpop.xlane.xlu1 %1053  ;;  %v1491_v15 = vsel %vm1317_vm2, %v1490_v32, %v1486_v42  ;;  %v1214_v19 = vmul.f32 0.0625, %v1117_v58 }
 0x183   :  { %v1382_v2 = vsel %vm1324_vm3, %v1381_v53, %v1377_v57  ;;  %v1193_v23 = vmul.f32 0.0625, %v1054_v4 }
 0x184   :  { %v1597_v49 = vsel %vm1596_vm6, %v1382_v2, %v1595_v33  ;;  %v1504_v25 = vrot.slane %v1214_v19, %v2965_v38 }
 0x185   :  { %v1048_v0 = vpop.xlane.xlu0 %1047 }
 0x186   :  { %v1099_v61 = vpop.xlane.xlu1 %1098  ;;  %v1191_v7 = vmul.f32 0.0625, %v1048_v0  ;;  %v1505_v42 = vsel %vm1310_vm1, %v1504_v25, %v1500_v20 }
 0x187   :  { %v1208_v48 = vmul.f32 0.0625, %v1099_v61 }
 0x188   :  { %v1395_v35 = vrot.slane %v1191_v7, %v2970_v24 }
 0x189   :  { %v1057_v59 = vpop.xlane.xlu0 %1056  ;;  %v1476_v31 = vrot.slane %v1208_v48, %v2980_v37 }
 0x18a   :  { %v1120_v18 = vpop.xlane.xlu1 %1119  ;;  %v1396_v40 = vsel %vm1317_vm2, %v1395_v35, %v1391_v8  ;;  %v1194_v8 = vmul.f32 0.0625, %v1057_v59 }
 0x18b   :  { %v1477_v56 = vsel %vm1324_vm3, %v1476_v31, %v1472_v46  ;;  %v1215_v6 = vmul.f32 0.0625, %v1120_v18  ;;  %v1405_v31 = vrot.slane %v1193_v23, %v2962_v5 }
 0x18d   :  { %v1111_v22 = vpop.xlane.xlu0 %1110  ;;  %v1509_v33 = vrot.slane %v1215_v6, %v2970_v24 }
 0x18e   :  { %v1129_v26 = vpop.xlane.xlu1 %1128  ;;  %v1212_v63 = vmul.f32 0.0625, %v1111_v22 }
 0x18f   :  { %v1510_v39 = vsel %vm1317_vm2, %v1509_v33, %v1505_v42  ;;  %v1218_v53 = vmul.f32 0.0625, %v1129_v26 }
 0x190   :  { %v1495_v55 = vrot.slane %v1212_v63, %v2980_v37 }
 0x191   :  { %v1126_v28 = vpop.xlane.xlu0 %1125  ;;  %v1523_v4 = vrot.slane %v1218_v53, %v2965_v38 }
 0x192   :  { %v1060_v21 = vpop.xlane.xlu1 %1059  ;;  %v1496_v10 = vsel %vm1324_vm3, %v1495_v55, %v1491_v15  ;;  %v1217_v36 = vmul.f32 0.0625, %v1126_v28 }
 0x193   :  { %v1606_v11 = vsel %vm1592_vm4, %v1496_v10, %v1477_v56  ;;  %v1195_v32 = vmul.f32 0.0625, %v1060_v21 }
 0x194   :  { %v1519_v18 = vrot.slane %v1217_v36, %v2962_v5 }
 0x195   :  { %v1051_v43 = vpop.xlane.xlu0 %1050  ;;  %v1414_v63 = vrot.slane %v1195_v32, %v2970_v24 }
 0x196   :  { %v1069_v1 = vpop.xlane.xlu1 %1068  ;;  %v1192_v13 = vmul.f32 0.0625, %v1051_v43  ;;  %v1524_v35 = vsel %vm1310_vm1, %v1523_v4, %v1519_v18 }
 0x197   :  { %v1198_v48 = vmul.f32 0.0625, %v1069_v1 }
 0x198   :  { %v1400_v3 = vrot.slane %v1192_v13, %v2980_v37 }
 0x199   :  { %v1066_v62 = vpop.xlane.xlu0 %1065  ;;  %v1428_v43 = vrot.slane %v1198_v48, %v2965_v38 }
 0x19a   :  { %v1132_v47 = vpop.xlane.xlu1 %1131  ;;  %v1401_v27 = vsel %vm1324_vm3, %v1400_v3, %v1396_v40  ;;  %v1197_v58 = vmul.f32 0.0625, %v1066_v62 }
 0x19b   :  { %v3027_v16 = vsel %vm1598_vm7, %v1401_v27, %v1597_v49  ;;  %v1409_v49 = vrot.slane %v1194_v8, %v2965_v38  ;;  %v1219_v0 = vmul.f32 0.0625, %v1132_v47 }
 0x19c   :  { %v1424_v26 = vrot.slane %v1197_v58, %v2962_v5 }
 0x19d   :  { %v1123_v12 = vpop.xlane.xlu0 %1122  ;;  %v1410_v21 = vsel %vm1310_vm1, %v1409_v49, %v1405_v31  ;;  %v1528_v56 = vrot.slane %v1219_v0, %v2970_v24 }
 0x19e   :  { %v1141_v51 = vpop.xlane.xlu1 %1140  ;;  %v1216_v44 = vmul.f32 0.0625, %v1123_v12  ;;  %v1415_v19 = vsel %vm1317_vm2, %v1414_v63, %v1410_v21  ;;  %v1429_v62 = vsel %vm1310_vm1, %v1428_v43, %v1424_v26 }
 0x19f   :  { %v1222_v59 = vmul.f32 0.0625, %v1141_v51  ;;  %v1529_v33 = vsel %vm1317_vm2, %v1528_v56, %v1524_v35 }
 0x1a0   :  { %v1514_v14 = vrot.slane %v1216_v44, %v2980_v37 }
 0x1a1   :  { %v1138_v17 = vpop.xlane.xlu0 %1137  ;;  %v1542_v3 = vrot.slane %v1222_v59, %v2965_v38 }
 0x1a2   :  { %v1072_v9 = vpop.xlane.xlu1 %1071  ;;  %v1515_v50 = vsel %vm1324_vm3, %v1514_v14, %v1510_v39  ;;  %v1221_v61 = vmul.f32 0.0625, %v1138_v17 }
 0x1a3   :  { %v3037_v34 = vsel %vm1594_vm5, %v1515_v50, %v1606_v11  ;;  %v1199_v55 = vmul.f32 0.0625, %v1072_v9 }
 0x1a4   :  { %v1538_v10 = vrot.slane %v1221_v61, %v2962_v5 }
 0x1a5   :  { %v1063_v54 = vpop.xlane.xlu0 %1062  ;;  %v1433_v47 = vrot.slane %v1199_v55, %v2970_v24 }
 0x1a6   :  { %v1081_v57 = vpop.xlane.xlu1 %1080  ;;  %v1196_v22 = vmul.f32 0.0625, %v1063_v54  ;;  %v1543_v12 = vsel %vm1310_vm1, %v1542_v3, %v1538_v10 }
 0x1a7   :  { %v1202_v40 = vmul.f32 0.0625, %v1081_v57 }
 0x1a8   :  { %v1419_v1 = vrot.slane %v1196_v22, %v2980_v37 }
 0x1a9   :  { %v1078_v46 = vpop.xlane.xlu0 %1077  ;;  %v1447_v9 = vrot.slane %v1202_v40, %v2965_v38 }
 0x1aa   :  { %v1144_v52 = vpop.xlane.xlu1 %1143  ;;  %v1201_v11 = vmul.f32 0.0625, %v1078_v46  ;;  %v1420_v42 = vsel %vm1324_vm3, %v1419_v1, %v1415_v19  ;;  %v1434_v46 = vsel %vm1317_vm2, %v1433_v47, %v1429_v62 }
 0x1ab   :  { %v1223_v6 = vmul.f32 0.0625, %v1144_v52  ;;  %v1601_v32 = vsel %vm1600_vm8, %v1420_v42, %v3027_v16 }
 0x1ac   :  { %v1443_v51 = vrot.slane %v1201_v11, %v2962_v5 }
 0x1ad   :  { %v1135_v45 = vpop.xlane.xlu0 %1134  ;;  %v1547_v50 = vrot.slane %v1223_v6, %v2970_v24 }
 0x1ae   :  { %v1153_v60 = vpop.xlane.xlu1 %1152  ;;  %v1220_v41 = vmul.f32 0.0625, %v1135_v45  ;;  %v1448_v8 = vsel %vm1310_vm1, %v1447_v9, %v1443_v51 }
 0x1af   :  { %v1226_v54 = vmul.f32 0.0625, %v1153_v60  ;;  %v1548_v49 = vsel %vm1317_vm2, %v1547_v50, %v1543_v12 }
 0x1b0   :  { %v1533_v52 = vrot.slane %v1220_v41, %v2980_v37 }
 0x1b1   :  { %v1150_v30 = vpop.xlane.xlu0 %1149  ;;  %v1561_v0 = vrot.slane %v1226_v54, %v2965_v38 }
 0x1b2   :  { %v1084_v29 = vpop.xlane.xlu1 %1083  ;;  %v1225_v20 = vmul.f32 0.0625, %v1150_v30  ;;  %v1534_v48 = vsel %vm1324_vm3, %v1533_v52, %v1529_v33 }
 0x1b3   :  { %v1203_v27 = vmul.f32 0.0625, %v1084_v29  ;;  %v1608_v11 = vsel %vm1596_vm6, %v1534_v48, %v3037_v34 }
 0x1b4   :  { %v1557_v36 = vrot.slane %v1225_v20, %v2962_v5 }
 0x1b5   :  { %v1075_v15 = vpop.xlane.xlu0 %1074  ;;  %v1452_v45 = vrot.slane %v1203_v27, %v2970_v24 }
 0x1b6   :  { %v1156_v2 = vpop.xlane.xlu1 %1155  ;;  %v1200_v13 = vmul.f32 0.0625, %v1075_v15  ;;  %v1562_v59 = vsel %vm1310_vm1, %v1561_v0, %v1557_v36 }
 0x1b7   :  { %v1227_v39 = vmul.f32 0.0625, %v1156_v2  ;;  %v1453_v63 = vsel %vm1317_vm2, %v1452_v45, %v1448_v8 }
 0x1b8   :  { %v1438_v14 = vrot.slane %v1200_v13, %v2980_v37 }
 0x1b9   :  { %v1147_v7 = vpop.xlane.xlu0 %1146  ;;  %v1566_v53 = vrot.slane %v1227_v39, %v2970_v24 }
 0x1ba   :  { %v1165_v28 = vpop.xlane.xlu1 %1164  ;;  %v1224_v17 = vmul.f32 0.0625, %v1147_v7  ;;  %v1439_v2 = vsel %vm1324_vm3, %v1438_v14, %v1434_v46 }
 0x1bb   :  { %v1230_v58 = vmul.f32 0.0625, %v1165_v28  ;;  %v1603_v55 = vsel %vm1602_vm9, %v1439_v2, %v1601_v32  ;;  %v1567_v7 = vsel %vm1317_vm2, %v1566_v53, %v1562_v59 }
 0x1bc   :  { %v1552_v60 = vrot.slane %v1224_v17, %v2980_v37 }
 0x1bd   :  { %v1162_v25 = vpop.xlane.xlu0 %1161  ;;  %v1580_v21 = vrot.slane %v1230_v58, %v2965_v38 }
 0x1be   :  { %v1229_v30 = vmul.f32 0.0625, %v1162_v25  ;;  %v1553_v28 = vsel %vm1324_vm3, %v1552_v60, %v1548_v49 }
 0x1bf   :  { %v1159_v44 = vpop.xlane.xlu1 %1158  ;;  %v1609_v13 = vsel %vm1598_vm7, %v1553_v28, %v1608_v11 }
 0x1c0   :  { %v1228_v57 = vmul.f32 0.0625, %v1159_v44  ;;  %v1576_v16 = vrot.slane %v1229_v30, %v2962_v5 }
 0x1c1   :  { %v1087_v29 = vpop.xlane.xlu0 %1086 }
 0x1c2   :  { %v1204_v23 = vmul.f32 0.0625, %v1087_v29  ;;  %v1571_v61 = vrot.slane %v1228_v57, %v2980_v37  ;;  %v1581_v35 = vsel %vm1310_vm1, %v1580_v21, %v1576_v16 }
 0x1c3   :  { %v1171_v15 = vpop.xlane.xlu1 %1170 }
 0x1c4   :  { %v1457_v18 = vrot.slane %v1204_v23, %v2980_v37  ;;  %v1232_v22 = vmul.f32 0.0625, %v1171_v15  ;;  %v1572_v5 = vsel %vm1324_vm3, %v1571_v61, %v1567_v7 }
 0x1c5   :  { %v1610_v19 = vsel %vm1600_vm8, %v1572_v5, %v1609_v13 }
 0x1c6   :  { %v1168_v31 = vpop.xlane.xlu0 %1167  ;;  %v1458_v26 = vsel %vm1324_vm3, %v1457_v18, %v1453_v63  ;;  %v1590_v43 = vrot.slane %v1232_v22, %v2980_v37 }
 0x1c7   :  { %v1231_v4 = vmul.f32 0.0625, %v1168_v31  ;;  %v1605_v56 = vsel %vm1604_vm10, %v1458_v26, %v1603_v55 }
 0x1c8   :  { %1729 = vmatprep.mubr.msk.f32.mxu0 %vm1612_vm11, %v1605_v56 }
 0x1c9   :  { %v1585_v10 = vrot.slane %v1231_v4, %v2970_v24  ;;  %v1712_v24 = vld [vmem:[%s3122_s4] ss:$0 sm:$0xff] }
 0x1cb   :  { %v1586_v1 = vsel %vm1317_vm2, %v1585_v10, %v1581_v35 }
 0x1cc   :  { %v1591_v38 = vsel %vm1324_vm3, %v1590_v43, %v1586_v1 }
 0x1cd   :  { %v1611_v3 = vsel %vm1602_vm9, %v1591_v38, %v1610_v19 }
 0x1ce   :  { %1730 = vmatmul.mubr.msk.f32.vlgmr.msra.gmra.mrb[0].mxu0 %vm1612_vm11, %v1611_v3 }
 0x2a1   :  { %v1731_v34 = vpop.f32.mrb[0].mxu0 }
 0x2a2   :  { %v1689_v37 = vadd.f32 %v1731_v34, %v1712_v24  ;;  %v1683_v40 = vpop.f32.mrb[1].mxu0 }
 0x2a3   :  { %v1684_v6 = vadd.f32 %v1712_v24, %v1683_v40 }
 0x2a4   :  { %1694 = vst.msk [vmem:[#allocation5 + $0x8] sm:$0x7f] %vm1693_vm12, %v1689_v37 }
 0x2a5   :  { %1692 = vst.msk [vmem:[#allocation5] sm:$0xff] %vm1612_vm11, %v1684_v6 }
 0x2a6   :  { %1790 = shalt.err (!%p1787_p12)
}
 0x2a7   :  { %s1791_s10 = scalar_lea.hbm %s3123_s5, 256 }
 0x2a8   :  { %p1792_p13 = scmp.ne.s32.totalorder %s3123_s5, %s1791_s10  ;;  %p1795_p0 = scmp.lt.u32.totalorder %s1791_s10, %s3123_s5 }
 0x2aa   :  { %p1797_p1 = pnand %p1795_p0, %p1792_p13 }
 0x2ac   :  { %1800 = shalt.err (!%p1797_p1)
}
 0x2ad   :  { %1706 = dma.vmem_to_hbm [thread:$0]  %s1701_s7, 256, %s3123_s5, [#allocation4], %s1806_s28, %s1806_s28, %s1807_s29  }
 0x2ae   :  { %1803 = dma.done.wait [#allocation4], 256  }
 0x2af   :  { %1804 = vsyncadd [#allocation4], 4294967040 }
 0x2b0   :  { %1710 = vsyncpa [#allocation3], 1 }
 0x2b1   :  { %1711 = vsyncpa [#allocation4], 1 }

</bundles_post_ra>
